<compile_context>
chip_gen: v7x
topology: tpu7x:2x2x1
jax: 0.10.0
libtpu: 0.0.40
codegen_flags: <defaults>
</compile_context>

<pallas_src>
import functools

import numpy as np
import jax
import jax.numpy as jnp
from jax import lax
from jax.experimental import pallas as pl
from jax.experimental.pallas import tpu as pltpu


# ---------------------------------------------------------------------------
# Operator construction (numpy, float64 -> float32), cached per (H, W)
# ---------------------------------------------------------------------------
def _ceil_to(v, m):
    return -(-v // m) * m


def _axis_factors(L, keep_full, keep_band):
    """Per-axis factors for a padded axis of size L.

    GB : (P, L)        shared band-select forward DFT (norm='forward'), rows in
                        standard ("zeroed-high") frequency order.
    E  : (keep_full, P) un-normalized full-size inverse DFT restricted to the
                        center-cropped output rows (zeroed-high path).
    Hm : (keep_band, P) un-normalized band-size inverse DFT (with the implicit
                        ifftshift permutation folded in) restricted to the
                        center-cropped output rows (low path).
    """
    s0 = L // 4
    s1 = (3 * L) // 4
    P = s1 - s0

    k_band = (s0 + np.arange(P) - L // 2) % L                       # kept freq bins
    m = np.arange(L)
    GB = np.exp(-2j * np.pi * np.outer(k_band, m) / L) / L          # (P, L)

    top_f = int(round((L - keep_full) / 2.0))                       # CenterCrop
    n_f = np.arange(top_f, top_f + keep_full)
    E = np.exp(2j * np.pi * np.outer(n_f, k_band) / L)              # (keep_full, P)

    top_b = int(round((P - keep_band) / 2.0))                       # CenterCrop
    n_b = np.arange(top_b, top_b + keep_band)
    Hm = np.exp(2j * np.pi * np.outer(n_b, np.arange(P) - P // 2) / P)  # (keep_band, P)
    return GB, E, Hm


def _pad2(a, rows, cols):
    out = np.zeros((rows, cols), dtype=a.dtype)
    out[: a.shape[0], : a.shape[1]] = a
    return out


@functools.lru_cache(maxsize=8)
def _build_operators(H, W):
    """Padded, cropped, real/imag-split operators for input of size (H, W)."""
    N = H + (3 * H // 4 + 1) + 3 * H // 4          # padded H axis
    M = W + (3 * W // 4 + 1) + 3 * W // 4          # padded W axis

    gb_n, e_n, h_n = _axis_factors(N, H, H // 2)   # acts on the H_pad (row) axis
    gb_m, e_m, h_m = _axis_factors(M, W, W // 2)   # acts on the W_pad (col) axis
    Q, P = gb_n.shape[0], gb_m.shape[0]

    Np, Mp = _ceil_to(N, 128), _ceil_to(M, 128)
    Qp, Pp = _ceil_to(Q, 128), _ceil_to(P, 128)
    Hp, Wp = _ceil_to(H, 8), _ceil_to(W, 128)
    H2p, W2p = _ceil_to(H // 2, 8), _ceil_to(W // 2, 128)

    gbn = _pad2(gb_n, Qp, Np)          # (Qp, Np)
    gbmt = _pad2(gb_m.T, Mp, Pp)       # (Mp, Pp)
    hn = _pad2(h_n, H2p, Qp)           # (H2p, Qp)
    hmt = _pad2(h_m.T, Pp, W2p)        # (Pp, W2p)
    en = _pad2(e_n, Hp, Qp)            # (Hp, Qp)
    emt = _pad2(e_m.T, Pp, Wp)         # (Pp, Wp)

    def dev(a):
        return jnp.asarray(a.astype(np.float32))

    return (dev(gbn.real), dev(gbn.imag),
            dev(gbmt.real), dev(gbmt.imag),
            dev(hn.real), dev(hn.imag),
            dev(hmt.real), dev(hmt.imag),
            dev(en.real), dev(en.imag),
            dev(emt.real), dev(emt.imag))


# ---------------------------------------------------------------------------
# Pallas spectral kernel
# ---------------------------------------------------------------------------
def _spectral_kernel(x_ref,
                     gbn_r, gbn_i, gbmt_r, gbmt_i,
                     hn_r, hn_i, hmt_r, hmt_i,
                     en_r, en_i, emt_r, emt_i,
                     low_ref, zh_ref):
    dot = functools.partial(jnp.dot, preferred_element_type=jnp.float32)

    # Load constant operators once per grid step (resident across the batch loop).
    GNr, GNi = gbn_r[...], gbn_i[...]
    GMr, GMi = gbmt_r[...], gbmt_i[...]
    HNr, HNi = hn_r[...], hn_i[...]
    HMr, HMi = hmt_r[...], hmt_i[...]
    ENr, ENi = en_r[...], en_i[...]
    EMr, EMi = emt_r[...], emt_i[...]

    def body(b, carry):
        x = x_ref[b]                                  # (Np, Mp) real

        # Shared band-select stage: Band = GB_N @ x @ GB_M^T  (complex Qp x Pp)
        ar = dot(GNr, x)
        ai = dot(GNi, x)
        br = dot(ar, GMr) - dot(ai, GMi)
        bi = dot(ar, GMi) + dot(ai, GMr)

        # Low path: | H_N @ Band @ H_M^T |  (already cropped to H/2 x W/2)
        cr = dot(HNr, br) - dot(HNi, bi)
        ci = dot(HNr, bi) + dot(HNi, br)
        lr = dot(cr, HMr) - dot(ci, HMi)
        li = dot(cr, HMi) + dot(ci, HMr)
        low_ref[b] = jnp.sqrt(lr * lr + li * li)

        # Zeroed-high path: | E_N @ Band @ E_M^T |  (already cropped to H x W)
        zr = dot(ENr, br) - dot(ENi, bi)
        zi = dot(ENr, bi) + dot(ENi, br)
        wr = dot(zr, EMr) - dot(zi, EMi)
        wi = dot(zr, EMi) + dot(zi, EMr)
        zh_ref[b] = jnp.sqrt(wr * wr + wi * wi)
        return carry

    lax.fori_loop(0, x_ref.shape[0], body, 0)


def _spectral_pallas(xp, ops, H, W):
    """xp: (B, C, N, M) reflect-padded input.  Returns (low (B,C,H/2,W/2),
    zeroed_high (B,C,H,W)) already cropped and in final orientation."""
    B, C, N, M = xp.shape
    (gbn_r, gbn_i, gbmt_r, gbmt_i, hn_r, hn_i, hmt_r, hmt_i,
     en_r, en_i, emt_r, emt_i) = ops

    Qp, Np = gbn_r.shape
    Mp, Pp = gbmt_r.shape
    H2p, W2p = hn_r.shape[0], hmt_r.shape[1]
    Hp, Wp = en_r.shape[0], emt_r.shape[1]

    BC = B * C
    # Images per grid step: amortize per-step overhead; capped at 4 and by a
    # VMEM budget (double-buffered x + output blocks) for v7x headroom.
    per_img_bytes = (Np * Mp + Hp * Wp + H2p * W2p) * 4 * 2
    bk = int(max(1, min(4, (24 * 1024 * 1024) // per_img_bytes)))
    bk = max(1, min(bk, BC))
    nblk = -(-BC // bk)
    BCp = nblk * bk

    xf = xp.reshape(BC, N, M)
    xf = jnp.pad(xf, ((0, BCp - BC), (0, Np - N), (0, Mp - M)))   # zero pad: exact

    mats = [gbn_r, gbn_i, gbmt_r, gbmt_i, hn_r, hn_i, hmt_r, hmt_i,
            en_r, en_i, emt_r, emt_i]
    mat_specs = [pl.BlockSpec(tuple(m.shape), lambda i: (0, 0)) for m in mats]

    low_p, zh_p = pl.pallas_call(
        _spectral_kernel,
        out_shape=(jax.ShapeDtypeStruct((BCp, H2p, W2p), jnp.float32),
                   jax.ShapeDtypeStruct((BCp, Hp, Wp), jnp.float32)),
        grid=(nblk,),
        in_specs=[pl.BlockSpec((bk, Np, Mp), lambda i: (i, 0, 0))] + mat_specs,
        out_specs=(pl.BlockSpec((bk, H2p, W2p), lambda i: (i, 0, 0)),
                   pl.BlockSpec((bk, Hp, Wp), lambda i: (i, 0, 0))),
        compiler_params=pltpu.CompilerParams(
            dimension_semantics=("parallel",),
            vmem_limit_bytes=48 * 1024 * 1024),
    )(xf, *mats)

    low = low_p[:BC, :H // 2, :W // 2].reshape(B, C, H // 2, W // 2)
    zh = zh_p[:BC, :H, :W].reshape(B, C, H, W)
    return low, zh


# ---------------------------------------------------------------------------
# Plain-JAX glue (concat / pixel-unshuffle / blend — left to XLA fusion)
# ---------------------------------------------------------------------------
def _pixel_unshuffle(x, r=2):
    B, C, H, W = x.shape
    x = x.reshape(B, C, H // r, r, W // r, r)
    x = jnp.transpose(x, (0, 1, 3, 5, 2, 4))
    return x.reshape(B, C * r * r, H // r, W // r)


def flc_pooling_random_alpha_blurred(x, alpha, transpose=True, padding="reflect"):
    """Forward pass of FLC_Pooling_random_alpha_blurred with default flags
    (test_wo_drop_alpha=False, test_drop_alpha=False, half_precision=False).

    Note: `transpose` only changes the internal orientation in the torch code;
    the separable-DFT formulation used here produces the identical result
    either way, so the flag is accepted but has no effect on the output.
    """
    del transpose
    B, C, H, W = x.shape
    x = x.astype(jnp.float32)
    xp = jnp.pad(x, ((0, 0), (0, 0),
                     (3 * H // 4 + 1, 3 * H // 4),
                     (3 * W // 4 + 1, 3 * W // 4)), mode=padding)

    ops = _build_operators(H, W)
    low_c, zh_c = _spectral_pallas(xp, ops, H, W)        # cropped + oriented

    low_cat = jnp.concatenate([low_c] * 4, axis=1)       # (B, 4C, H/2, W/2)
    high = _pixel_unshuffle(x - zh_c, 2)                 # (B, 4C, H/2, W/2)
    a = jnp.asarray(alpha, jnp.float32)
    return low_cat * (1.0 - a) + high * a


# ---------------------------------------------------------------------------
# Pure-numpy reference (mirrors the torch forward) for validation
# ---------------------------------------------------------------------------
def _reference_np(x_np, alpha):
    B, C, H, W = x_np.shape
    xp = np.pad(x_np, ((0, 0), (0, 0),
                       (3 * H // 4 + 1, 3 * H // 4),
                       (3 * W // 4 + 1, 3 * W // 4)), mode="reflect")
    xt = np.transpose(xp, (0, 1, 3, 2)).astype(np.float32)
    in_freq = np.fft.fftshift(np.fft.fft2(xt, norm="forward"), axes=(-2, -1))
    M, N = xt.shape[2], xt.shape[3]
    sM0, sM1 = int(M / 4), int(M / 4 * 3)
    sN0, sN1 = int(N / 4), int(N / 4 * 3)

    low = in_freq[:, :, sM0:sM1, sN0:sN1]
    low = np.abs(np.fft.ifft2(np.fft.ifftshift(low, axes=(-2, -1)), norm="forward"))
    low = np.transpose(low, (0, 1, 3, 2))
    low = np.concatenate([low] * 4, axis=1)

    zh = np.zeros_like(in_freq)
    zh[:, :, sM0:sM1, sN0:sN1] = in_freq[:, :, sM0:sM1, sN0:sN1]
    zh = np.abs(np.fft.ifft2(np.fft.ifftshift(zh, axes=(-2, -1)), norm="forward"))
    zh = np.transpose(zh, (0, 1, 3, 2))
    top = int(round((zh.shape[-2] - H) / 2.0))
    left = int(round((zh.shape[-1] - W) / 2.0))
    zh = zh[..., top:top + H, left:left + W]

    high = x_np - zh
    high = (high.reshape(B, C, H // 2, 2, W // 2, 2)
                .transpose(0, 1, 3, 5, 2, 4)
                .reshape(B, 4 * C, H // 2, W // 2)) * alpha

    h2, w2 = H // 2, W // 2
    t2 = int(round((low.shape[-2] - h2) / 2.0))
    l2 = int(round((low.shape[-1] - w2) / 2.0))
    low_c = low[..., t2:t2 + h2, l2:l2 + w2]
    return low_c * (1.0 - alpha) + high


if __name__ == "__main__":
    key = jax.random.PRNGKey(0)
    x = jax.random.normal(key, (2, 4, 16, 16), dtype=jnp.float32)
    alpha = 0.3  # nn.Parameter(torch.tensor(0.3)) — deterministic init

    out = flc_pooling_random_alpha_blurred(x, alpha)
    out = jax.block_until_ready(out)

    ref = _reference_np(np.asarray(x), alpha)
    err = float(np.max(np.abs(np.asarray(out) - ref)))
    assert out.shape == (2, 16, 8, 8), out.shape
    # default (bf16-pass) MXU precision: allow a slightly looser tolerance
    assert err < 5e-2, f"mismatch vs numpy reference: max abs err = {err}"
    print("KERNEL_OK")
</pallas_src>

<mosaic_0001>
module attributes {stable_mosaic.version = 11 : i64} {
  func.func @_spectral_kernel(%arg0: i32, %arg1: memref<4x128x128xf32, #tpu.memory_space<vmem>>, %arg2: memref<128x128xf32, #tpu.memory_space<vmem>>, %arg3: memref<128x128xf32, #tpu.memory_space<vmem>>, %arg4: memref<128x128xf32, #tpu.memory_space<vmem>>, %arg5: memref<128x128xf32, #tpu.memory_space<vmem>>, %arg6: memref<8x128xf32, #tpu.memory_space<vmem>>, %arg7: memref<8x128xf32, #tpu.memory_space<vmem>>, %arg8: memref<128x128xf32, #tpu.memory_space<vmem>>, %arg9: memref<128x128xf32, #tpu.memory_space<vmem>>, %arg10: memref<16x128xf32, #tpu.memory_space<vmem>>, %arg11: memref<16x128xf32, #tpu.memory_space<vmem>>, %arg12: memref<128x128xf32, #tpu.memory_space<vmem>>, %arg13: memref<128x128xf32, #tpu.memory_space<vmem>>, %arg14: memref<4x8x128xf32, #tpu.memory_space<vmem>>, %arg15: memref<4x16x128xf32, #tpu.memory_space<vmem>>) attributes {dimension_semantics = [#tpu.dimension_semantics<parallel>], iteration_bounds = array<i64: 2>, scalar_prefetch = 0 : i64, scratch_operands = 0 : i64, tpu.core_type = #tpu.core_type<tc>, window_params = [{transform_indices = @transform_0, window_bounds = array<i64: 4, 128, 128>}, {pipeline_mode = #tpu.pipeline_mode<synchronous>, transform_indices = @transform_1, window_bounds = array<i64: 128, 128>}, {pipeline_mode = #tpu.pipeline_mode<synchronous>, transform_indices = @transform_2, window_bounds = array<i64: 128, 128>}, {pipeline_mode = #tpu.pipeline_mode<synchronous>, transform_indices = @transform_3, window_bounds = array<i64: 128, 128>}, {pipeline_mode = #tpu.pipeline_mode<synchronous>, transform_indices = @transform_4, window_bounds = array<i64: 128, 128>}, {pipeline_mode = #tpu.pipeline_mode<synchronous>, transform_indices = @transform_5, window_bounds = array<i64: 8, 128>}, {pipeline_mode = #tpu.pipeline_mode<synchronous>, transform_indices = @transform_6, window_bounds = array<i64: 8, 128>}, {pipeline_mode = #tpu.pipeline_mode<synchronous>, transform_indices = @transform_7, window_bounds = array<i64: 128, 128>}, {pipeline_mode = #tpu.pipeline_mode<synchronous>, transform_indices = @transform_8, window_bounds = array<i64: 128, 128>}, {pipeline_mode = #tpu.pipeline_mode<synchronous>, transform_indices = @transform_9, window_bounds = array<i64: 16, 128>}, {pipeline_mode = #tpu.pipeline_mode<synchronous>, transform_indices = @transform_10, window_bounds = array<i64: 16, 128>}, {pipeline_mode = #tpu.pipeline_mode<synchronous>, transform_indices = @transform_11, window_bounds = array<i64: 128, 128>}, {pipeline_mode = #tpu.pipeline_mode<synchronous>, transform_indices = @transform_12, window_bounds = array<i64: 128, 128>}, {transform_indices = @transform_13, window_bounds = array<i64: 4, 8, 128>}, {transform_indices = @transform_14, window_bounds = array<i64: 4, 16, 128>}]} {
    %c0 = arith.constant 0 : index
    %c0_0 = arith.constant 0 : index
    %0 = vector.load %arg2[%c0, %c0_0] : memref<128x128xf32, #tpu.memory_space<vmem>>, vector<128x128xf32>
    %c0_1 = arith.constant 0 : index
    %c0_2 = arith.constant 0 : index
    %1 = vector.load %arg3[%c0_1, %c0_2] : memref<128x128xf32, #tpu.memory_space<vmem>>, vector<128x128xf32>
    %c0_3 = arith.constant 0 : index
    %c0_4 = arith.constant 0 : index
    %2 = vector.load %arg4[%c0_3, %c0_4] : memref<128x128xf32, #tpu.memory_space<vmem>>, vector<128x128xf32>
    %c0_5 = arith.constant 0 : index
    %c0_6 = arith.constant 0 : index
    %3 = vector.load %arg5[%c0_5, %c0_6] : memref<128x128xf32, #tpu.memory_space<vmem>>, vector<128x128xf32>
    %c0_7 = arith.constant 0 : index
    %c0_8 = arith.constant 0 : index
    %4 = vector.load %arg6[%c0_7, %c0_8] : memref<8x128xf32, #tpu.memory_space<vmem>>, vector<8x128xf32>
    %c0_9 = arith.constant 0 : index
    %c0_10 = arith.constant 0 : index
    %5 = vector.load %arg7[%c0_9, %c0_10] : memref<8x128xf32, #tpu.memory_space<vmem>>, vector<8x128xf32>
    %c0_11 = arith.constant 0 : index
    %c0_12 = arith.constant 0 : index
    %6 = vector.load %arg8[%c0_11, %c0_12] : memref<128x128xf32, #tpu.memory_space<vmem>>, vector<128x128xf32>
    %c0_13 = arith.constant 0 : index
    %c0_14 = arith.constant 0 : index
    %7 = vector.load %arg9[%c0_13, %c0_14] : memref<128x128xf32, #tpu.memory_space<vmem>>, vector<128x128xf32>
    %c0_15 = arith.constant 0 : index
    %c0_16 = arith.constant 0 : index
    %8 = vector.load %arg10[%c0_15, %c0_16] : memref<16x128xf32, #tpu.memory_space<vmem>>, vector<16x128xf32>
    %c0_17 = arith.constant 0 : index
    %c0_18 = arith.constant 0 : index
    %9 = vector.load %arg11[%c0_17, %c0_18] : memref<16x128xf32, #tpu.memory_space<vmem>>, vector<16x128xf32>
    %c0_19 = arith.constant 0 : index
    %c0_20 = arith.constant 0 : index
    %10 = vector.load %arg12[%c0_19, %c0_20] : memref<128x128xf32, #tpu.memory_space<vmem>>, vector<128x128xf32>
    %c0_21 = arith.constant 0 : index
    %c0_22 = arith.constant 0 : index
    %11 = vector.load %arg13[%c0_21, %c0_22] : memref<128x128xf32, #tpu.memory_space<vmem>>, vector<128x128xf32>
    %c0_i32 = arith.constant 0 : i32
    %c4_i32 = arith.constant 4 : i32
    %12 = arith.addi %c0_i32, %c4_i32 : i32
    %c1_i32 = arith.constant 1 : i32
    scf.for %arg16 = %c0_i32 to %12 step %c1_i32  : i32 {
      %13 = arith.index_cast %arg16 : i32 to index
      %c0_24 = arith.constant 0 : index
      %c0_25 = arith.constant 0 : index
      %14 = vector.load %arg1[%13, %c0_24, %c0_25] : memref<4x128x128xf32, #tpu.memory_space<vmem>>, vector<1x128x128xf32>
      %15 = vector.shape_cast %14 : vector<1x128x128xf32> to vector<128x128xf32>
      %cst = arith.constant dense<0.000000e+00> : vector<128x128xf32>
      %16 = tpu.matmul %0, %15, %cst {dimension_numbers = #tpu.dot_dimension_numbers<[1], [0], [0], [1], [0, 0, 1, 1], [], []>} : vector<128x128xf32>, vector<128x128xf32>, vector<128x128xf32> -> vector<128x128xf32>
      %cst_26 = arith.constant dense<0.000000e+00> : vector<128x128xf32>
      %17 = tpu.matmul %1, %15, %cst_26 {dimension_numbers = #tpu.dot_dimension_numbers<[1], [0], [0], [1], [0, 0, 1, 1], [], []>} : vector<128x128xf32>, vector<128x128xf32>, vector<128x128xf32> -> vector<128x128xf32>
      %cst_27 = arith.constant dense<0.000000e+00> : vector<128x128xf32>
      %18 = tpu.matmul %16, %2, %cst_27 {dimension_numbers = #tpu.dot_dimension_numbers<[1], [0], [0], [1], [0, 0, 1, 1], [], []>} : vector<128x128xf32>, vector<128x128xf32>, vector<128x128xf32> -> vector<128x128xf32>
      %cst_28 = arith.constant dense<0.000000e+00> : vector<128x128xf32>
      %19 = tpu.matmul %17, %3, %cst_28 {dimension_numbers = #tpu.dot_dimension_numbers<[1], [0], [0], [1], [0, 0, 1, 1], [], []>} : vector<128x128xf32>, vector<128x128xf32>, vector<128x128xf32> -> vector<128x128xf32>
      %20 = arith.subf %18, %19 : vector<128x128xf32>
      %cst_29 = arith.constant dense<0.000000e+00> : vector<128x128xf32>
      %21 = tpu.matmul %16, %3, %cst_29 {dimension_numbers = #tpu.dot_dimension_numbers<[1], [0], [0], [1], [0, 0, 1, 1], [], []>} : vector<128x128xf32>, vector<128x128xf32>, vector<128x128xf32> -> vector<128x128xf32>
      %cst_30 = arith.constant dense<0.000000e+00> : vector<128x128xf32>
      %22 = tpu.matmul %17, %2, %cst_30 {dimension_numbers = #tpu.dot_dimension_numbers<[1], [0], [0], [1], [0, 0, 1, 1], [], []>} : vector<128x128xf32>, vector<128x128xf32>, vector<128x128xf32> -> vector<128x128xf32>
      %23 = arith.addf %21, %22 : vector<128x128xf32>
      %cst_31 = arith.constant dense<0.000000e+00> : vector<8x128xf32>
      %24 = tpu.matmul %4, %20, %cst_31 {dimension_numbers = #tpu.dot_dimension_numbers<[1], [0], [0], [1], [0, 0, 1, 1], [], []>} : vector<8x128xf32>, vector<128x128xf32>, vector<8x128xf32> -> vector<8x128xf32>
      %cst_32 = arith.constant dense<0.000000e+00> : vector<8x128xf32>
      %25 = tpu.matmul %5, %23, %cst_32 {dimension_numbers = #tpu.dot_dimension_numbers<[1], [0], [0], [1], [0, 0, 1, 1], [], []>} : vector<8x128xf32>, vector<128x128xf32>, vector<8x128xf32> -> vector<8x128xf32>
      %26 = arith.subf %24, %25 : vector<8x128xf32>
      %cst_33 = arith.constant dense<0.000000e+00> : vector<8x128xf32>
      %27 = tpu.matmul %4, %23, %cst_33 {dimension_numbers = #tpu.dot_dimension_numbers<[1], [0], [0], [1], [0, 0, 1, 1], [], []>} : vector<8x128xf32>, vector<128x128xf32>, vector<8x128xf32> -> vector<8x128xf32>
      %cst_34 = arith.constant dense<0.000000e+00> : vector<8x128xf32>
      %28 = tpu.matmul %5, %20, %cst_34 {dimension_numbers = #tpu.dot_dimension_numbers<[1], [0], [0], [1], [0, 0, 1, 1], [], []>} : vector<8x128xf32>, vector<128x128xf32>, vector<8x128xf32> -> vector<8x128xf32>
      %29 = arith.addf %27, %28 : vector<8x128xf32>
      %cst_35 = arith.constant dense<0.000000e+00> : vector<8x128xf32>
      %30 = tpu.matmul %26, %6, %cst_35 {dimension_numbers = #tpu.dot_dimension_numbers<[1], [0], [0], [1], [0, 0, 1, 1], [], []>} : vector<8x128xf32>, vector<128x128xf32>, vector<8x128xf32> -> vector<8x128xf32>
      %cst_36 = arith.constant dense<0.000000e+00> : vector<8x128xf32>
      %31 = tpu.matmul %29, %7, %cst_36 {dimension_numbers = #tpu.dot_dimension_numbers<[1], [0], [0], [1], [0, 0, 1, 1], [], []>} : vector<8x128xf32>, vector<128x128xf32>, vector<8x128xf32> -> vector<8x128xf32>
      %32 = arith.subf %30, %31 : vector<8x128xf32>
      %cst_37 = arith.constant dense<0.000000e+00> : vector<8x128xf32>
      %33 = tpu.matmul %26, %7, %cst_37 {dimension_numbers = #tpu.dot_dimension_numbers<[1], [0], [0], [1], [0, 0, 1, 1], [], []>} : vector<8x128xf32>, vector<128x128xf32>, vector<8x128xf32> -> vector<8x128xf32>
      %cst_38 = arith.constant dense<0.000000e+00> : vector<8x128xf32>
      %34 = tpu.matmul %29, %6, %cst_38 {dimension_numbers = #tpu.dot_dimension_numbers<[1], [0], [0], [1], [0, 0, 1, 1], [], []>} : vector<8x128xf32>, vector<128x128xf32>, vector<8x128xf32> -> vector<8x128xf32>
      %35 = arith.addf %33, %34 : vector<8x128xf32>
      %36 = arith.mulf %32, %32 : vector<8x128xf32>
      %37 = arith.mulf %35, %35 : vector<8x128xf32>
      %38 = arith.addf %36, %37 : vector<8x128xf32>
      %39 = math.sqrt %38 : vector<8x128xf32>
      %40 = arith.index_cast %arg16 : i32 to index
      %c0_39 = arith.constant 0 : index
      %c0_40 = arith.constant 0 : index
      %41 = vector.load %arg14[%40, %c0_39, %c0_40] : memref<4x8x128xf32, #tpu.memory_space<vmem>>, vector<1x8x128xf32>
      %42 = vector.shape_cast %41 : vector<1x8x128xf32> to vector<8x128xf32>
      %43 = vector.shape_cast %39 : vector<8x128xf32> to vector<1x8x128xf32>
      tpu.vector_store %arg14[%40, %c0_39, %c0_40], %43 {strides = array<i32>} : memref<4x8x128xf32, #tpu.memory_space<vmem>>, vector<1x8x128xf32>,
      %cst_41 = arith.constant dense<0.000000e+00> : vector<16x128xf32>
      %44 = tpu.matmul %8, %20, %cst_41 {dimension_numbers = #tpu.dot_dimension_numbers<[1], [0], [0], [1], [0, 0, 1, 1], [], []>} : vector<16x128xf32>, vector<128x128xf32>, vector<16x128xf32> -> vector<16x128xf32>
      %cst_42 = arith.constant dense<0.000000e+00> : vector<16x128xf32>
      %45 = tpu.matmul %9, %23, %cst_42 {dimension_numbers = #tpu.dot_dimension_numbers<[1], [0], [0], [1], [0, 0, 1, 1], [], []>} : vector<16x128xf32>, vector<128x128xf32>, vector<16x128xf32> -> vector<16x128xf32>
      %46 = arith.subf %44, %45 : vector<16x128xf32>
      %cst_43 = arith.constant dense<0.000000e+00> : vector<16x128xf32>
      %47 = tpu.matmul %8, %23, %cst_43 {dimension_numbers = #tpu.dot_dimension_numbers<[1], [0], [0], [1], [0, 0, 1, 1], [], []>} : vector<16x128xf32>, vector<128x128xf32>, vector<16x128xf32> -> vector<16x128xf32>
      %cst_44 = arith.constant dense<0.000000e+00> : vector<16x128xf32>
      %48 = tpu.matmul %9, %20, %cst_44 {dimension_numbers = #tpu.dot_dimension_numbers<[1], [0], [0], [1], [0, 0, 1, 1], [], []>} : vector<16x128xf32>, vector<128x128xf32>, vector<16x128xf32> -> vector<16x128xf32>
      %49 = arith.addf %47, %48 : vector<16x128xf32>
      %cst_45 = arith.constant dense<0.000000e+00> : vector<16x128xf32>
      %50 = tpu.matmul %46, %10, %cst_45 {dimension_numbers = #tpu.dot_dimension_numbers<[1], [0], [0], [1], [0, 0, 1, 1], [], []>} : vector<16x128xf32>, vector<128x128xf32>, vector<16x128xf32> -> vector<16x128xf32>
      %cst_46 = arith.constant dense<0.000000e+00> : vector<16x128xf32>
      %51 = tpu.matmul %49, %11, %cst_46 {dimension_numbers = #tpu.dot_dimension_numbers<[1], [0], [0], [1], [0, 0, 1, 1], [], []>} : vector<16x128xf32>, vector<128x128xf32>, vector<16x128xf32> -> vector<16x128xf32>
      %52 = arith.subf %50, %51 : vector<16x128xf32>
      %cst_47 = arith.constant dense<0.000000e+00> : vector<16x128xf32>
      %53 = tpu.matmul %46, %11, %cst_47 {dimension_numbers = #tpu.dot_dimension_numbers<[1], [0], [0], [1], [0, 0, 1, 1], [], []>} : vector<16x128xf32>, vector<128x128xf32>, vector<16x128xf32> -> vector<16x128xf32>
      %cst_48 = arith.constant dense<0.000000e+00> : vector<16x128xf32>
      %54 = tpu.matmul %49, %10, %cst_48 {dimension_numbers = #tpu.dot_dimension_numbers<[1], [0], [0], [1], [0, 0, 1, 1], [], []>} : vector<16x128xf32>, vector<128x128xf32>, vector<16x128xf32> -> vector<16x128xf32>
      %55 = arith.addf %53, %54 : vector<16x128xf32>
      %56 = arith.mulf %52, %52 : vector<16x128xf32>
      %57 = arith.mulf %55, %55 : vector<16x128xf32>
      %58 = arith.addf %56, %57 : vector<16x128xf32>
      %59 = math.sqrt %58 : vector<16x128xf32>
      %60 = arith.index_cast %arg16 : i32 to index
      %c0_49 = arith.constant 0 : index
      %c0_50 = arith.constant 0 : index
      %61 = vector.load %arg15[%60, %c0_49, %c0_50] : memref<4x16x128xf32, #tpu.memory_space<vmem>>, vector<1x16x128xf32>
      %62 = vector.shape_cast %61 : vector<1x16x128xf32> to vector<16x128xf32>
      %63 = vector.shape_cast %59 : vector<16x128xf32> to vector<1x16x128xf32>
      tpu.vector_store %arg15[%60, %c0_49, %c0_50], %63 {strides = array<i32>} : memref<4x16x128xf32, #tpu.memory_space<vmem>>, vector<1x16x128xf32>,
    }
    %c4_i32_23 = arith.constant 4 : i32
    return
  }
  func.func @transform_0(%arg0: i32) -> (i32, i32, i32) {
    %c0_i32 = arith.constant 0 : i32
    %c0_i32_0 = arith.constant 0 : i32
    %c0_i32_1 = arith.constant 0 : i32
    return %arg0, %c0_i32, %c0_i32_0 : i32, i32, i32
  }
  func.func @transform_1(%arg0: i32) -> (i32, i32) {
    %c0_i32 = arith.constant 0 : i32
    %c0_i32_0 = arith.constant 0 : i32
    %c0_i32_1 = arith.constant 0 : i32
    return %c0_i32, %c0_i32_0 : i32, i32
  }
  func.func @transform_2(%arg0: i32) -> (i32, i32) {
    %c0_i32 = arith.constant 0 : i32
    %c0_i32_0 = arith.constant 0 : i32
    %c0_i32_1 = arith.constant 0 : i32
    return %c0_i32, %c0_i32_0 : i32, i32
  }
  func.func @transform_3(%arg0: i32) -> (i32, i32) {
    %c0_i32 = arith.constant 0 : i32
    %c0_i32_0 = arith.constant 0 : i32
    %c0_i32_1 = arith.constant 0 : i32
    return %c0_i32, %c0_i32_0 : i32, i32
  }
  func.func @transform_4(%arg0: i32) -> (i32, i32) {
    %c0_i32 = arith.constant 0 : i32
    %c0_i32_0 = arith.constant 0 : i32
    %c0_i32_1 = arith.constant 0 : i32
    return %c0_i32, %c0_i32_0 : i32, i32
  }
  func.func @transform_5(%arg0: i32) -> (i32, i32) {
    %c0_i32 = arith.constant 0 : i32
    %c0_i32_0 = arith.constant 0 : i32
    %c0_i32_1 = arith.constant 0 : i32
    return %c0_i32, %c0_i32_0 : i32, i32
  }
  func.func @transform_6(%arg0: i32) -> (i32, i32) {
    %c0_i32 = arith.constant 0 : i32
    %c0_i32_0 = arith.constant 0 : i32
    %c0_i32_1 = arith.constant 0 : i32
    return %c0_i32, %c0_i32_0 : i32, i32
  }
  func.func @transform_7(%arg0: i32) -> (i32, i32) {
    %c0_i32 = arith.constant 0 : i32
    %c0_i32_0 = arith.constant 0 : i32
    %c0_i32_1 = arith.constant 0 : i32
    return %c0_i32, %c0_i32_0 : i32, i32
  }
  func.func @transform_8(%arg0: i32) -> (i32, i32) {
    %c0_i32 = arith.constant 0 : i32
    %c0_i32_0 = arith.constant 0 : i32
    %c0_i32_1 = arith.constant 0 : i32
    return %c0_i32, %c0_i32_0 : i32, i32
  }
  func.func @transform_9(%arg0: i32) -> (i32, i32) {
    %c0_i32 = arith.constant 0 : i32
    %c0_i32_0 = arith.constant 0 : i32
    %c0_i32_1 = arith.constant 0 : i32
    return %c0_i32, %c0_i32_0 : i32, i32
  }
  func.func @transform_10(%arg0: i32) -> (i32, i32) {
    %c0_i32 = arith.constant 0 : i32
    %c0_i32_0 = arith.constant 0 : i32
    %c0_i32_1 = arith.constant 0 : i32
    return %c0_i32, %c0_i32_0 : i32, i32
  }
  func.func @transform_11(%arg0: i32) -> (i32, i32) {
    %c0_i32 = arith.constant 0 : i32
    %c0_i32_0 = arith.constant 0 : i32
    %c0_i32_1 = arith.constant 0 : i32
    return %c0_i32, %c0_i32_0 : i32, i32
  }
  func.func @transform_12(%arg0: i32) -> (i32, i32) {
    %c0_i32 = arith.constant 0 : i32
    %c0_i32_0 = arith.constant 0 : i32
    %c0_i32_1 = arith.constant 0 : i32
    return %c0_i32, %c0_i32_0 : i32, i32
  }
  func.func @transform_13(%arg0: i32) -> (i32, i32, i32) {
    %c0_i32 = arith.constant 0 : i32
    %c0_i32_0 = arith.constant 0 : i32
    %c0_i32_1 = arith.constant 0 : i32
    return %arg0, %c0_i32, %c0_i32_0 : i32, i32, i32
  }
  func.func @transform_14(%arg0: i32) -> (i32, i32, i32) {
    %c0_i32 = arith.constant 0 : i32
    %c0_i32_0 = arith.constant 0 : i32
    %c0_i32_1 = arith.constant 0 : i32
    return %arg0, %c0_i32, %c0_i32_0 : i32, i32, i32
  }
}

</mosaic_0001>

<bundles_post_ra>
// kernel: tpu_custom_call.1
= control target key start
LH: loop header
LB: loop body
LE: loop exit
PB: predicated region body
PF: predicated region fallthrough
CT: control target
= control target key end

     0   :  { %s7235_s0 = inlined_call_operand.hbm [shape: f32[8,128,128], index: 0, kind: input, shape index: {}]   ;;  %s7236_s1 = inlined_call_operand.hbm [shape: f32[128,128], index: 1, kind: input, shape index: {}]   ;;  %s7237_s2 = inlined_call_operand.hbm [shape: f32[128,128], index: 2, kind: input, shape index: {}]   ;;  %s7238_s3 = inlined_call_operand.hbm [shape: f32[128,128], index: 3, kind: input, shape index: {}]   ;;  %s7239_s4 = inlined_call_operand.hbm [shape: f32[128,128], index: 4, kind: input, shape index: {}]   ;;  %s7240_s5 = inlined_call_operand.hbm [shape: f32[8,128], index: 5, kind: input, shape index: {}]   ;;  %s7241_s6 = inlined_call_operand.hbm [shape: f32[8,128], index: 6, kind: input, shape index: {}]   ;;  %s7242_s7 = inlined_call_operand.hbm [shape: f32[128,128], index: 7, kind: input, shape index: {}]   ;;  %s7243_s8 = inlined_call_operand.hbm [shape: f32[128,128], index: 8, kind: input, shape index: {}]   ;;  %s7244_s9 = inlined_call_operand.vmem [shape: f32[16,128], index: 9, kind: input, shape index: {}]   ;;  %s7245_s10 = inlined_call_operand.vmem [shape: f32[16,128], index: 10, kind: input, shape index: {}]   ;;  %s7246_s11 = inlined_call_operand.hbm [shape: f32[128,128], index: 11, kind: input, shape index: {}]   ;;  %s7247_s12 = inlined_call_operand.hbm [shape: f32[128,128], index: 12, kind: input, shape index: {}]   ;;  %s7248_s13 = inlined_call_operand.hbm [shape: f32[8,8,128], index: 13, kind: output, shape index: {0}]   ;;  %s7249_s14 = inlined_call_operand.hbm [shape: f32[8,16,128], index: 14, kind: output, shape index: {1}]  }
   0x1   :  { %7270 = sst [smem:[#allocation135_spill]] %s7235_s0 }
   0x2   :  { %7271 = sst [smem:[#allocation136_spill]] %s7236_s1 }
   0x3   :  { %7272 = sst [smem:[#allocation137_spill]] %s7237_s2 }
   0x4   :  { %7273 = sst [smem:[#allocation138_spill]] %s7238_s3 }
   0x5   :  { %7274 = sst [smem:[#allocation139_spill]] %s7239_s4 }
   0x6   :  { %7275 = sst [smem:[#allocation140_spill]] %s7240_s5 }
   0x7   :  { %7276 = sst [smem:[#allocation141_spill]] %s7241_s6 }
   0x8   :  { %7277 = sst [smem:[#allocation142_spill]] %s7242_s7 }
   0x9   :  { %7278 = sst [smem:[#allocation143_spill]] %s7243_s8 }
   0xa   :  { %7279 = sst [smem:[#allocation144_spill]] %s7244_s9 }
   0xb   :  { %7280 = sst [smem:[#allocation145_spill]] %s7245_s10 }
   0xc   :  { %7281 = sst [smem:[#allocation146_spill]] %s7248_s13 }
   0xd   :  { %7282 = sst [smem:[#allocation147_spill]] %s7249_s14 }
   0xe   :  { %20 = vsyncpa [#allocation3], 0 }
   0xf   :  { %22 = vsyncpa [#allocation3 + $0x1], 0 }
  0x10   :  { %23 = vsyncpa [#allocation6], 0 }
  0x11   :  { %24 = vsyncpa [#allocation9], 0 }
  0x12   :  { %25 = vsyncpa [#allocation12], 0 }
  0x13   :  { %26 = vsyncpa [#allocation15], 0 }
  0x14   :  { %27 = vsyncpa [#allocation18], 0 }
  0x15   :  { %28 = vsyncpa [#allocation4], 0 }
  0x16   :  { %30 = vsyncpa [#allocation4 + $0x1], 0 }
  0x17   :  { %31 = vsyncpa [#allocation22], 0 }
  0x18   :  { %33 = vsyncpa [#allocation22 + $0x1], 0  ;;  %s5922_s29 = smov 0   ;;  %s5924_s30 = smov 0  }
  0x19   :  { %s5926_s15 = smov 0   ;;  %s5928_s16 = smov 0  }
  0x1a LB: > { %s5827_s17 = smov [#allocation5]   ;;  %s5943_s19 = sadd.s32 4294967295, %s5821_s16   ;;  %s5821_s16 = sphi %s5928_s16, %s7534_s16   ;;  %s5817_s15 = sphi %s5926_s15, %s7533_s15   ;;  %s5813_s30 = sphi %s5924_s30, %s7532_s30   ;;  %s5809_s29 = sphi %s5922_s29, %s7531_s29  }
  0x1b   : > { %s386_s18 = sshll.u32 %s5827_s17, 4  ;;  %p3137_p0 = scmp.ge.s32.totalorder %s5821_s16, 1  ;;  %s5948_s18 = int_to_ptr.vmem [resolvable:$true] %s386_s18 }
  0x1c   : > { %p7258_p1 = scmp.eq.s32.totalorder %s5943_s19, 0  ;;  %p374_p2 = scmp.lt.s32.totalorder %s5821_s16, 3 }
  0x1d   : > { %s5828_s21 = smov [#allocation8]   ;;  %s5829_s24 = smov [#allocation11]  }
  0x1e   : > { %p5950_p3 = pnand %p3137_p0, %p374_p2  ;;  %s412_s22 = sshll.u32 %s5828_s21, 4  ;;  %s5963_s22 = int_to_ptr.vmem [resolvable:$true] %s412_s22 }
  0x1f   : > { %s439_s25 = sshll.u32 %s5829_s24, 4  ;;  %s7286_s1 = sld [smem:[#allocation136_spill]]  ;;  %s5965_s25 = int_to_ptr.vmem [resolvable:$true] %s439_s25 }
  0x20   : > { %s7283_s20 = scalar_select %p5950_p3, 1, 0 }
  0x21   : > { %p5262_p5 = pneg %p5950_p3 }
  0x22   : > { %7284 = sst [smem:[#allocation31_spill]] %s7283_s20 }
  0x23   : > { %p5959_p6 = pnand %p5262_p5, %p7258_p1 }
  0x25   : > { %s5389_s28 = scalar_lea.hbm %s7286_s1, 2048  ;;  %p5975_p8 = pneg %p5959_p6 }
  0x26   : > { %p5390_p7 = scmp.ne.s32.totalorder %s7286_s1, %s5389_s28  ;;  %p5396_p11 = scmp.lt.u32.totalorder %s5389_s28, %s7286_s1 }
  0x28   : > { %p5392_p9 = pnand %p5975_p8, %p5390_p7 }
  0x2a   : > { %p5393_p10 = pneg %p5392_p9 }
  0x2c   : > { %p5398_p12 = pnand %p5396_p11, %p5393_p10 }
  0x2e   : > { %5401 = shalt.err (!%p5398_p12)
}
  0x2f   : > { %s5402_s14 = scalar_lea.vmem %s5948_s18, 2048  ;;  %p5410_p5 = scmp.lt.s32.totalorder %s5948_s18, %s5948_s18 }
  0x30   : > { %p5403_p13 = scmp.ne.s32.totalorder %s5948_s18, %s5402_s14  ;;  %p5411_p4 = scmp.lt.s32.totalorder %s5402_s14, %s5402_s14 }
  0x32   : > { %p5405_p0 = pnand %p5403_p13, %p5975_p8  ;;  %p5412_p7 = por %p5411_p4, %p5410_p5 }
  0x34   : > { %p5406_p2 = pneg %p5405_p0 }
  0x36   : > { %p5413_p9 = pnand %p5412_p7, %p5406_p2 }
  0x38   : > { %5416 = shalt.err (!%p5413_p9)
}
  0x39   : > { %s7256_s26 = smov 128   ;;  %s7260_s13 = smov 8  }
  0x3a   : > { %5265 = dma.hbm_to_vmem [thread:$0]  (!%p5959_p6), %s7286_s1, 2048, %s5948_s18, [#allocation6], %s7256_s26, %s7256_s26, %s7260_s13  }
  0x3b   : > { %s7288_s3 = sld [smem:[#allocation138_spill]] }
  0x41   : > { %s5417_s14 = scalar_lea.hbm %s7288_s3, 2048 }
  0x42   : > { %p5418_p4 = scmp.ne.s32.totalorder %s7288_s3, %s5417_s14  ;;  %p5424_p12 = scmp.lt.u32.totalorder %s5417_s14, %s7288_s3 }
  0x44   : > { %p5420_p10 = pnand %p5418_p4, %p5975_p8 }
  0x46   : > { %p5421_p11 = pneg %p5420_p10 }
  0x48   : > { %p5426_p13 = pnand %p5424_p12, %p5421_p11 }
  0x4a   : > { %5429 = shalt.err (!%p5426_p13)
}
  0x4b   : > { %s5430_s18 = scalar_lea.vmem %s5963_s22, 2048  ;;  %p5438_p7 = scmp.lt.s32.totalorder %s5963_s22, %s5963_s22 }
  0x4c   : > { %p5431_p0 = scmp.ne.s32.totalorder %s5963_s22, %s5430_s18  ;;  %p5439_p9 = scmp.lt.s32.totalorder %s5430_s18, %s5430_s18 }
  0x4e   : > { %p5433_p2 = pnand %p5431_p0, %p5975_p8  ;;  %p5440_p4 = por %p5439_p9, %p5438_p7 }
  0x50   : > { %p5434_p5 = pneg %p5433_p2 }
  0x52   : > { %p5441_p10 = pnand %p5440_p4, %p5434_p5 }
  0x54   : > { %5444 = shalt.err (!%p5441_p10)
}
  0x55   : > { %5271 = dma.hbm_to_vmem [thread:$0]  (!%p5959_p6), %s7288_s3, 2048, %s5963_s22, [#allocation9], %s7256_s26, %s7256_s26, %s7260_s13  }
  0x56   : > { %s7289_s5 = sld [smem:[#allocation140_spill]] }
  0x5c   : > { %s5445_s27 = scalar_lea.hbm %s7289_s5, 128 }
  0x5d   : > { %p5446_p11 = scmp.ne.s32.totalorder %s7289_s5, %s5445_s27  ;;  %p5452_p0 = scmp.lt.u32.totalorder %s5445_s27, %s7289_s5 }
  0x5f   : > { %p5448_p12 = pnand %p5446_p11, %p5975_p8 }
  0x61   : > { %p5449_p13 = pneg %p5448_p12 }
  0x63   : > { %p5454_p2 = pnand %p5452_p0, %p5449_p13 }
  0x65   : > { %5457 = shalt.err (!%p5454_p2)
}
  0x66   : > { %s5458_s22 = scalar_lea.vmem %s5965_s25, 128  ;;  %p5466_p4 = scmp.lt.s32.totalorder %s5965_s25, %s5965_s25 }
  0x67   : > { %p5459_p5 = scmp.ne.s32.totalorder %s5965_s25, %s5458_s22  ;;  %p5467_p10 = scmp.lt.s32.totalorder %s5458_s22, %s5458_s22 }
  0x69   : > { %p5461_p7 = pnand %p5459_p5, %p5975_p8  ;;  %p5468_p11 = por %p5467_p10, %p5466_p4 }
  0x6b   : > { %p5462_p9 = pneg %p5461_p7 }
  0x6d   : > { %p5469_p12 = pnand %p5468_p11, %p5462_p9 }
  0x6f   : > { %5472 = shalt.err (!%p5469_p12)
}
  0x70   : > { %5277 = dma.hbm_to_vmem [thread:$0]  (!%p5959_p6), %s7289_s5, 128, %s5965_s25, [#allocation12]  }
  0x71   : > { %s5832_s9 = smov [#allocation14]   ;;  %s5833_s20 = smov [#allocation17]  }
  0x72   : > { %s460_s10 = sshll.u32 %s5832_s9, 4  ;;  %s492_s27 = sshll.u32 %s5833_s20, 4  ;;  %s461_s10 = int_to_ptr.vmem [resolvable:$true] %s460_s10  ;;  %s493_s27 = int_to_ptr.vmem [resolvable:$true] %s492_s27 }
  0x73   : > { %s7290_s7 = sld [smem:[#allocation142_spill]] }
  0x79   : > { %s5473_s24 = scalar_lea.hbm %s7290_s7, 2048 }
  0x7a   : > { %p5474_p13 = scmp.ne.s32.totalorder %s7290_s7, %s5473_s24  ;;  %p5480_p5 = scmp.lt.u32.totalorder %s5473_s24, %s7290_s7 }
  0x7c   : > { %p5476_p0 = pnand %p5474_p13, %p5975_p8 }
  0x7e   : > { %p5477_p2 = pneg %p5476_p0 }
  0x80   : > { %p5482_p7 = pnand %p5480_p5, %p5477_p2 }
  0x82   : > { %5485 = shalt.err (!%p5482_p7)
}
  0x83   : > { %s5486_s25 = scalar_lea.vmem %s461_s10, 2048  ;;  %p5494_p11 = scmp.lt.s32.totalorder %s461_s10, %s461_s10 }
  0x84   : > { %p5487_p9 = scmp.ne.s32.totalorder %s461_s10, %s5486_s25  ;;  %p5495_p12 = scmp.lt.s32.totalorder %s5486_s25, %s5486_s25 }
  0x86   : > { %p5489_p4 = pnand %p5487_p9, %p5975_p8  ;;  %p5496_p1 = por %p5495_p12, %p5494_p11 }
  0x88   : > { %p5490_p10 = pneg %p5489_p4 }
  0x8a   : > { %p5497_p3 = pnand %p5496_p1, %p5490_p10 }
  0x8c   : > { %5500 = shalt.err (!%p5497_p3)
}
  0x8d   : > { %s7291_s0 = smov 128   ;;  %s5501_s17 = scalar_lea.hbm %s7246_s11, 2048 }
  0x8e   : > { %5283 = dma.hbm_to_vmem [thread:$0]  (!%p5959_p6), %s7290_s7, 2048, %s461_s10, [#allocation15], %s7291_s0, %s7291_s0, %s7260_s13  }
  0x8f   : > { %p5502_p1 = scmp.ne.s32.totalorder %s7246_s11, %s5501_s17  ;;  %p5508_p0 = scmp.lt.u32.totalorder %s5501_s17, %s7246_s11 }
  0x91   : > { %p5504_p3 = pnand %p5502_p1, %p5975_p8 }
  0x93   : > { %p5505_p13 = pneg %p5504_p3 }
  0x95   : > { %p5510_p2 = pnand %p5508_p0, %p5505_p13 }
  0x97   : > { %5513 = shalt.err (!%p5510_p2)
}
  0x98   : > { %s5514_s25 = scalar_lea.vmem %s493_s27, 2048  ;;  %p5522_p4 = scmp.lt.s32.totalorder %s493_s27, %s493_s27 }
  0x99   : > { %p5515_p5 = scmp.ne.s32.totalorder %s493_s27, %s5514_s25  ;;  %p5523_p10 = scmp.lt.s32.totalorder %s5514_s25, %s5514_s25 }
  0x9b   : > { %p5517_p7 = pnand %p5515_p5, %p5975_p8  ;;  %p5524_p11 = por %p5523_p10, %p5522_p4 }
  0x9d   : > { %p5518_p9 = pneg %p5517_p7 }
  0x9f   : > { %p5525_p12 = pnand %p5524_p11, %p5518_p9 }
  0xa1   : > { %5528 = shalt.err (!%p5525_p12)
}
  0xa2   : > { %5289 = dma.hbm_to_vmem [thread:$0]  (!%p5959_p6), %s7246_s11, 2048, %s493_s27, [#allocation18], %s7291_s0, %s7291_s0, %s7260_s13  }
  0xa3   : > { %s5834_s9 = smov [#allocation7]   ;;  %s5835_s28 = smov [#allocation10]  }
  0xa4   : > { %s399_s20 = sshll.u32 %s5834_s9, 4  ;;  %s425_s17 = sshll.u32 %s5835_s28, 4  ;;  %s400_s20 = int_to_ptr.vmem [resolvable:$true] %s399_s20  ;;  %s426_s17 = int_to_ptr.vmem [resolvable:$true] %s425_s17 }
  0xa5   : > { %s7292_s2 = sld [smem:[#allocation137_spill]] }
  0xab   : > { %s5529_s22 = scalar_lea.hbm %s7292_s2, 2048 }
  0xac   : > { %p5530_p1 = scmp.ne.s32.totalorder %s7292_s2, %s5529_s22  ;;  %p5536_p0 = scmp.lt.u32.totalorder %s5529_s22, %s7292_s2 }
  0xae   : > { %p5532_p3 = pnand %p5530_p1, %p5975_p8 }
  0xb0   : > { %p5533_p13 = pneg %p5532_p3 }
  0xb2   : > { %p5538_p2 = pnand %p5536_p0, %p5533_p13 }
  0xb4   : > { %5541 = shalt.err (!%p5538_p2)
}
  0xb5   : > { %s5542_s27 = scalar_lea.vmem %s400_s20, 2048  ;;  %p5550_p4 = scmp.lt.s32.totalorder %s400_s20, %s400_s20 }
  0xb6   : > { %p5543_p5 = scmp.ne.s32.totalorder %s400_s20, %s5542_s27  ;;  %p5551_p10 = scmp.lt.s32.totalorder %s5542_s27, %s5542_s27 }
  0xb8   : > { %p5545_p7 = pnand %p5543_p5, %p5975_p8  ;;  %p5552_p11 = por %p5551_p10, %p5550_p4 }
  0xba   : > { %p5546_p9 = pneg %p5545_p7 }
  0xbc   : > { %p5553_p12 = pnand %p5552_p11, %p5546_p9 }
  0xbe   : > { %5556 = shalt.err (!%p5553_p12)
}
  0xbf   : > { %5268 = dma.hbm_to_vmem [thread:$0]  (!%p5959_p6), %s7292_s2, 2048, %s400_s20, [#allocation6], %s7291_s0, %s7291_s0, %s7260_s13  }
  0xc0   : > { %s7293_s4 = sld [smem:[#allocation139_spill]] }
  0xc6   : > { %s5557_s24 = scalar_lea.hbm %s7293_s4, 2048 }
  0xc7   : > { %p5558_p1 = scmp.ne.s32.totalorder %s7293_s4, %s5557_s24  ;;  %p5564_p0 = scmp.lt.u32.totalorder %s5557_s24, %s7293_s4 }
  0xc9   : > { %p5560_p3 = pnand %p5558_p1, %p5975_p8 }
  0xcb   : > { %p5561_p13 = pneg %p5560_p3 }
  0xcd   : > { %p5566_p2 = pnand %p5564_p0, %p5561_p13 }
  0xcf   : > { %5569 = shalt.err (!%p5566_p2)
}
  0xd0   : > { %s5570_s10 = scalar_lea.vmem %s426_s17, 2048  ;;  %p5578_p4 = scmp.lt.s32.totalorder %s426_s17, %s426_s17 }
  0xd1   : > { %p5571_p5 = scmp.ne.s32.totalorder %s426_s17, %s5570_s10  ;;  %p5579_p10 = scmp.lt.s32.totalorder %s5570_s10, %s5570_s10 }
  0xd3   : > { %p5573_p7 = pnand %p5571_p5, %p5975_p8  ;;  %p5580_p11 = por %p5579_p10, %p5578_p4 }
  0xd5   : > { %p5574_p9 = pneg %p5573_p7 }
  0xd7   : > { %p5581_p12 = pnand %p5580_p11, %p5574_p9 }
  0xd9   : > { %5584 = shalt.err (!%p5581_p12)
}
  0xda   : > { %5274 = dma.hbm_to_vmem [thread:$0]  (!%p5959_p6), %s7293_s4, 2048, %s426_s17, [#allocation9], %s7291_s0, %s7291_s0, %s7260_s13  }
  0xdb   : > { %s5836_s1 = smov [#allocation13]   ;;  %s5837_s9 = smov [#allocation16]  }
  0xdc   : > { %s450_s26 = sshll.u32 %s5836_s1, 4  ;;  %s473_s28 = sshll.u32 %s5837_s9, 4  ;;  %s451_s26 = int_to_ptr.vmem [resolvable:$true] %s450_s26  ;;  %s474_s28 = int_to_ptr.vmem [resolvable:$true] %s473_s28 }
  0xdd   : > { %s7294_s6 = sld [smem:[#allocation141_spill]] }
  0xe3   : > { %s5585_s22 = scalar_lea.hbm %s7294_s6, 128 }
  0xe4   : > { %p5586_p1 = scmp.ne.s32.totalorder %s7294_s6, %s5585_s22  ;;  %p5592_p0 = scmp.lt.u32.totalorder %s5585_s22, %s7294_s6 }
  0xe6   : > { %p5588_p3 = pnand %p5586_p1, %p5975_p8 }
  0xe8   : > { %p5589_p13 = pneg %p5588_p3 }
  0xea   : > { %p5594_p2 = pnand %p5592_p0, %p5589_p13 }
  0xec   : > { %5597 = shalt.err (!%p5594_p2)
}
  0xed   : > { %s5598_s17 = scalar_lea.vmem %s451_s26, 128  ;;  %p5606_p4 = scmp.lt.s32.totalorder %s451_s26, %s451_s26 }
  0xee   : > { %p5599_p5 = scmp.ne.s32.totalorder %s451_s26, %s5598_s17  ;;  %p5607_p10 = scmp.lt.s32.totalorder %s5598_s17, %s5598_s17 }
  0xf0   : > { %p5601_p7 = pnand %p5599_p5, %p5975_p8  ;;  %p5608_p11 = por %p5607_p10, %p5606_p4 }
  0xf2   : > { %p5602_p9 = pneg %p5601_p7 }
  0xf4   : > { %p5609_p12 = pnand %p5608_p11, %p5602_p9 }
  0xf6   : > { %5612 = shalt.err (!%p5609_p12)
}
  0xf7   : > { %5280 = dma.hbm_to_vmem [thread:$0]  (!%p5959_p6), %s7294_s6, 128, %s451_s26, [#allocation12]  }
  0xf8   : > { %s7295_s8 = sld [smem:[#allocation143_spill]] }
  0xfe   : > { %s5613_s14 = scalar_lea.hbm %s7295_s8, 2048 }
  0xff   : > { %p5614_p1 = scmp.ne.s32.totalorder %s7295_s8, %s5613_s14  ;;  %p5620_p0 = scmp.lt.u32.totalorder %s5613_s14, %s7295_s8 }
 0x101   : > { %p5616_p3 = pnand %p5614_p1, %p5975_p8 }
 0x103   : > { %p5617_p13 = pneg %p5616_p3 }
 0x105   : > { %p5622_p2 = pnand %p5620_p0, %p5617_p13 }
 0x107   : > { %5625 = shalt.err (!%p5622_p2)
}
 0x108   : > { %s5626_s20 = scalar_lea.vmem %s474_s28, 2048  ;;  %p5634_p4 = scmp.lt.s32.totalorder %s474_s28, %s474_s28 }
 0x109   : > { %p5627_p5 = scmp.ne.s32.totalorder %s474_s28, %s5626_s20  ;;  %p5635_p10 = scmp.lt.s32.totalorder %s5626_s20, %s5626_s20 }
 0x10b   : > { %p5629_p7 = pnand %p5627_p5, %p5975_p8  ;;  %p5636_p11 = por %p5635_p10, %p5634_p4 }
 0x10d   : > { %p5630_p9 = pneg %p5629_p7 }
 0x10f   : > { %p5637_p12 = pnand %p5636_p11, %p5630_p9 }
 0x111   : > { %5640 = shalt.err (!%p5637_p12)
}
 0x112   : > { %5286 = dma.hbm_to_vmem [thread:$0]  (!%p5959_p6), %s7295_s8, 2048, %s474_s28, [#allocation15], %s7291_s0, %s7291_s0, %s7260_s13  }
 0x113   : > { %s5838_s27 = smov [#allocation19]   ;;  %s5641_s14 = scalar_lea.hbm %s7247_s12, 2048 }
 0x114   : > { %s505_s1 = sshll.u32 %s5838_s27, 4  ;;  %p5642_p1 = scmp.ne.s32.totalorder %s7247_s12, %s5641_s14  ;;  %s506_s1 = int_to_ptr.vmem [resolvable:$true] %s505_s1 }
 0x115   : > { %p5648_p0 = scmp.lt.u32.totalorder %s5641_s14, %s7247_s12 }
 0x116   : > { %p5644_p3 = pnand %p5642_p1, %p5975_p8 }
 0x118   : > { %p5645_p13 = pneg %p5644_p3 }
 0x11a   : > { %p5650_p2 = pnand %p5648_p0, %p5645_p13 }
 0x11c   : > { %5653 = shalt.err (!%p5650_p2)
}
 0x11d   : > { %s5654_s28 = scalar_lea.vmem %s506_s1, 2048  ;;  %p5662_p4 = scmp.lt.s32.totalorder %s506_s1, %s506_s1 }
 0x11e   : > { %p5655_p5 = scmp.ne.s32.totalorder %s506_s1, %s5654_s28  ;;  %p5663_p10 = scmp.lt.s32.totalorder %s5654_s28, %s5654_s28 }
 0x120   : > { %p5657_p7 = pnand %p5655_p5, %p5975_p8  ;;  %p5664_p11 = por %p5663_p10, %p5662_p4 }
 0x122   : > { %p5658_p9 = pneg %p5657_p7 }
 0x124   : > { %p5665_p12 = pnand %p5664_p11, %p5658_p9 }
 0x126   : > { %5668 = shalt.err (!%p5665_p12)
}
 0x127   : > { %5292 = dma.hbm_to_vmem [thread:$0]  (!%p5959_p6), %s7247_s12, 2048, %s506_s1, [#allocation18], %s7291_s0, %s7291_s0, %s7260_s13  }
 0x128   : > { %s3136_s23 = sadd.s32 4294967294, %s5821_s16   ;;  %s6194_s21 = sadd.s32 1, %s5821_s16  }
 0x129   : > { %s43_s17 = ssub.s32 %s5821_s16, %s6194_s21  ;;  %s46_s27 = sadd.s32 1, %s5817_s15 }
 0x12a   : > { %p44_p8 = scmp.eq.s32.totalorder %s43_s17, 0  ;;  %p53_p1 = scmp.ne.s32.totalorder %s5817_s15, %s5813_s30 }
 0x12b   : > { %p54_p3 = scmp.eq.s32.totalorder %s5821_s16, 0  ;;  %p59_p13 = scmp.ne.s32.totalorder %s5813_s30, %s5809_s29 }
 0x12c   : > { %s6205_s9 = scalar_select %p44_p8, %s5817_s15, %s46_s27  }
 0x12d   : > { %p6207_p0 = por %p54_p3, %p53_p1  ;;  %p7297_p2 = scmp.eq.s32.totalorder %s5943_s19, 0 }
 0x12e   : > { %p335_p5 = scmp.eq.s32.totalorder %s5943_s19, 1  ;;  %p341_p7 = scmp.eq.s32.totalorder %s3136_s23, 1 }
 0x12f   : > { %p6213_p6 = por %p7297_p2, %p59_p13  ;;  %p5314_p9 = scmp.lt.s32.totalorder %s5821_s16, 2 }
 0x130   : > { %s519_s14 = sand.u32 1, %s5817_s15   ;;  %p6220_p4 = por %p335_p5, %p53_p1 }
 0x131   : > { %p6224_p10 = por %p341_p7, %p59_p13  ;;  %s3149_s25 = sshll.u32 %s519_s14, 9 }
 0x132   : > { %s7299_s22 = scalar_select %p6220_p4, 1, 0 }
 0x133   : > { %s7300_s18 = scalar_select %p6224_p10, 1, 0 }
 0x134   : > { %s3180_s10 = sshll.u32 %s5821_s16, 13  ;;  %s7301_s26 = sld [smem:[#allocation135_spill]] }
 0x135   : > { %s523_s23 = scalar_lea.vmem [#allocation2], %s3149_s25  ;;  %p6238_p11 = pnand %p5314_p9, %p6207_p0 }
 0x136   : > { %s531_s27 = sshll.u32 %s523_s23, 4  ;;  %s6242_s2 = scalar_lea.sflag [#allocation3], %s519_s14  ;;  %s6234_s27 = int_to_ptr.vmem [resolvable:$true] %s531_s27 }
 0x137   : > { %p5671_p8 = pneg %p6238_p11 }
 0x13a   : > { %s6232_s17 = scalar_lea.hbm %s7301_s26, %s3180_s10  ;;  %s5674_s24 = scalar_lea.hbm %s7301_s26, 16384 }
 0x13b   : > { %s5669_s28 = scalar_lea.hbm %s6232_s17, 8192  ;;  %p5675_p13 = scmp.lt.u32.totalorder %s6232_s17, %s7301_s26 }
 0x13c   : > { %p5670_p12 = scmp.ne.s32.totalorder %s6232_s17, %s5669_s28  ;;  %p5676_p0 = scmp.lt.u32.totalorder %s5674_s24, %s5669_s28 }
 0x13d   : > { %p5678_p5 = scmp.lt.u32.totalorder %s5669_s28, %s6232_s17 }
 0x13e   : > { %p5672_p1 = pnand %p5671_p8, %p5670_p12  ;;  %p5677_p2 = por %p5676_p0, %p5675_p13 }
 0x140   : > { %p5673_p3 = pneg %p5672_p1  ;;  %p5679_p7 = por %p5678_p5, %p5677_p2 }
 0x142   : > { %p5680_p9 = pnand %p5679_p7, %p5673_p3 }
 0x144   : > { %5683 = shalt.err (!%p5680_p9)
}
 0x145   : > { %s5684_s14 = scalar_lea.vmem %s6234_s27, 8192  ;;  %s5839_s25 = smov [#allocation2]  }
 0x146   : > { %p5685_p12 = scmp.ne.s32.totalorder %s6234_s27, %s5684_s14  ;;  %s5689_s10 = sshll.u32 %s5839_s25, 4  ;;  %s5690_s10 = int_to_ptr.vmem [resolvable:$false] %s5689_s10 }
 0x147   : > { %s5691_s20 = scalar_lea.vmem %s5690_s10, 16384  ;;  %p5692_p4 = scmp.lt.s32.totalorder %s6234_s27, %s5690_s10 }
 0x148   : > { %p5687_p1 = pnand %p5685_p12, %p5671_p8  ;;  %p5693_p13 = scmp.lt.s32.totalorder %s5691_s20, %s5684_s14 }
 0x14a   : > { %p5688_p10 = pneg %p5687_p1  ;;  %p5694_p0 = por %p5693_p13, %p5692_p4 }
 0x14c   : > { %p5695_p2 = pnand %p5694_p0, %p5688_p10 }
 0x14e   : > { %5698 = shalt.err (!%p5695_p2)
}
 0x14f   : > { %s7303_s28 = smov 8   ;;  %s7304_s24 = sld [smem:[#allocation31_spill]] }
 0x150   : > { %5296 = dma.hbm_to_vmem [thread:$0]  (!%p6238_p11), %s6232_s17, 8192, %s6234_s27, %s6242_s2, %s7291_s0, %s7291_s0, %s7303_s28  }
 0x155   : > { %p7305_p8 = scmp.ne.s32.totalorder %s7304_s24, 0 }
 0x157   : > { %543 = sbr.rel (%p7305_p8) target bundleno = 1828 (0x724), region = 72 }
 0x15e   : > { %s6276_s23 = sand.u32 1, %s5813_s30  }
 0x15f   : > { %s3154_s14 = sshll.u32 %s6276_s23, 9  ;;  %s546_s25 = scalar_lea.sflag [#allocation3], %s6276_s23 }
 0x160   : > { %s6280_s10 = scalar_lea.vmem [#allocation2], %s3154_s14 }
 0x161   : > { %5776 = dma.done.wait (%p6213_p6), %s546_s25, 8192  }
 0x162   : > { %5778 = vsyncadd (%p6213_p6), %s546_s25, 4294959104  ;;  %p7306_p4 = scmp.eq.s32.totalorder %s5943_s19, 0 }
 0x164   : > { %5780 = dma.done.wait (%p7306_p4), [#allocation6], 4096   ;;  %p7307_p10 = pmov %p7306_p4 }
 0x165   : > { %p7308_p11 = pmov %p7306_p4 }
 0x166   : > { %5782 = vsyncadd (%p7307_p10), [#allocation6], 4294963200 }
 0x167   : > { %5784 = dma.done.wait (%p7308_p11), [#allocation9], 4096   ;;  %p7309_p3 = pmov %p7306_p4 }
 0x169   : > { %5786 = vsyncadd (%p7309_p3), [#allocation9], 4294963200  ;;  %p7310_p5 = pmov %p7309_p3 }
 0x16a   : > { %p7311_p7 = pmov %p7309_p3 }
 0x16b   : > { %5788 = dma.done.wait (%p7310_p5), [#allocation12], 256  }
 0x16c   : > { %5790 = vsyncadd (%p7311_p7), [#allocation12], 4294967040  ;;  %p7312_p6 = pmov %p7309_p3 }
 0x16d   : > { %p7313_p9 = pmov %p7309_p3 }
 0x16e   : > { %5792 = dma.done.wait (%p7312_p6), [#allocation15], 4096  }
 0x16f   : > { %5794 = vsyncadd (%p7313_p9), [#allocation15], 4294963200  ;;  %p7314_p12 = pmov %p7309_p3 }
 0x170   : > { %p7315_p1 = pmov %p7309_p3 }
 0x171   : > { %5796 = dma.done.wait (%p7314_p12), [#allocation18], 4096  }
 0x172   : > { %5798 = vsyncadd (%p7315_p1), [#allocation18], 4294963200  ;;  %s3165_s2 = sshll.u32 %s6276_s23, 5  ;;  %v6308_v0 = vld [vmem:[#allocation5] sm:$0xff]  ;;  %v6310_v1 = vld [vmem:[#allocation5 + $0x8] sm:$0xff]  ;;  %s7386_s17 = sld [smem:[#allocation144_spill]] }
 0x173   : > { %7316 = vst [vmem:[#allocation32_spill] sm:$0xff] %v6308_v0  ;;  %7317 = vst [vmem:[#allocation33_spill] sm:$0xff] %v6310_v1  ;;  %v6312_v2 = vld [vmem:[#allocation5 + $0x10] sm:$0xff]  ;;  %v6314_v3 = vld [vmem:[#allocation5 + $0x18] sm:$0xff]  ;;  %s7389_s14 = sld [smem:[#allocation145_spill]]  ;;  %s6590_s13 = scalar_lea.vmem [#allocation20], %s3165_s2 }
 0x174   : > { %7318 = vst [vmem:[#allocation34_spill] sm:$0xff] %v6312_v2  ;;  %7319 = vst [vmem:[#allocation35_spill] sm:$0xff] %v6314_v3  ;;  %v6316_v4 = vld [vmem:[#allocation5 + $0x20] sm:$0xff]  ;;  %v6318_v5 = vld [vmem:[#allocation5 + $0x28] sm:$0xff]  ;;  %s7421_s0 = sshll.u32 %s6276_s23, 6  ;;  %s6596_s27 = smov 0  }
 0x175   : > { %7320 = vst [vmem:[#allocation36_spill] sm:$0xff] %v6316_v4  ;;  %7321 = vst [vmem:[#allocation37_spill] sm:$0xff] %v6318_v5  ;;  %v6320_v6 = vld [vmem:[#allocation5 + $0x30] sm:$0xff]  ;;  %v6322_v7 = vld [vmem:[#allocation5 + $0x38] sm:$0xff]  ;;  %s6594_s1 = scalar_lea.vmem [#allocation21], %s7421_s0 }
 0x176   : > { %7322 = vst [vmem:[#allocation38_spill] sm:$0xff] %v6320_v6  ;;  %7323 = vst [vmem:[#allocation39_spill] sm:$0xff] %v6322_v7  ;;  %v6324_v8 = vld [vmem:[#allocation5 + $0x40] sm:$0xff]  ;;  %v6326_v9 = vld [vmem:[#allocation5 + $0x48] sm:$0xff] }
 0x177   : > { %7324 = vst [vmem:[#allocation40_spill] sm:$0xff] %v6324_v8  ;;  %7325 = vst [vmem:[#allocation41_spill] sm:$0xff] %v6326_v9  ;;  %v6328_v10 = vld [vmem:[#allocation5 + $0x50] sm:$0xff]  ;;  %v6330_v11 = vld [vmem:[#allocation5 + $0x58] sm:$0xff] }
 0x178   : > { %7326 = vst [vmem:[#allocation42_spill] sm:$0xff] %v6328_v10  ;;  %7327 = vst [vmem:[#allocation43_spill] sm:$0xff] %v6330_v11  ;;  %v6332_v12 = vld [vmem:[#allocation5 + $0x60] sm:$0xff]  ;;  %v6334_v13 = vld [vmem:[#allocation5 + $0x68] sm:$0xff] }
 0x179   : > { %7328 = vst [vmem:[#allocation44_spill] sm:$0xff] %v6332_v12  ;;  %v6336_v14 = vld [vmem:[#allocation5 + $0x70] sm:$0xff]  ;;  %v6338_v15 = vld [vmem:[#allocation5 + $0x78] sm:$0xff]  ;;  %v6340_v16 = vld [vmem:[#allocation7] sm:$0xff] }
 0x17a   : > { %v6342_v17 = vld [vmem:[#allocation7 + $0x8] sm:$0xff]  ;;  %v6344_v18 = vld [vmem:[#allocation7 + $0x10] sm:$0xff]  ;;  %v6346_v19 = vld [vmem:[#allocation7 + $0x18] sm:$0xff] }
 0x17b   : > { %v6348_v20 = vld [vmem:[#allocation7 + $0x20] sm:$0xff]  ;;  %v6350_v21 = vld [vmem:[#allocation7 + $0x28] sm:$0xff]  ;;  %v6352_v22 = vld [vmem:[#allocation7 + $0x30] sm:$0xff] }
 0x17c   : > { %v6354_v23 = vld [vmem:[#allocation7 + $0x38] sm:$0xff]  ;;  %v6356_v24 = vld [vmem:[#allocation7 + $0x40] sm:$0xff]  ;;  %v6358_v25 = vld [vmem:[#allocation7 + $0x48] sm:$0xff] }
 0x17d   : > { %v6360_v26 = vld [vmem:[#allocation7 + $0x50] sm:$0xff]  ;;  %v6362_v27 = vld [vmem:[#allocation7 + $0x58] sm:$0xff]  ;;  %v6364_v28 = vld [vmem:[#allocation7 + $0x60] sm:$0xff] }
 0x17e   : > { %v6366_v29 = vld [vmem:[#allocation7 + $0x68] sm:$0xff]  ;;  %v6368_v30 = vld [vmem:[#allocation7 + $0x70] sm:$0xff]  ;;  %v6370_v31 = vld [vmem:[#allocation7 + $0x78] sm:$0xff] }
 0x17f   : > { %v6372_v32 = vld [vmem:[#allocation8] sm:$0xff]  ;;  %v6374_v33 = vld [vmem:[#allocation8 + $0x8] sm:$0xff]  ;;  %v6376_v34 = vld [vmem:[#allocation8 + $0x10] sm:$0xff] }
 0x180   : > { %7329 = vst [vmem:[#allocation45_spill] sm:$0xff] %v6372_v32  ;;  %7330 = vst [vmem:[#allocation46_spill] sm:$0xff] %v6374_v33  ;;  %v6378_v35 = vld [vmem:[#allocation8 + $0x18] sm:$0xff]  ;;  %v6380_v36 = vld [vmem:[#allocation8 + $0x20] sm:$0xff] }
 0x181   : > { %7331 = vst [vmem:[#allocation47_spill] sm:$0xff] %v6376_v34  ;;  %7332 = vst [vmem:[#allocation48_spill] sm:$0xff] %v6378_v35  ;;  %v6382_v37 = vld [vmem:[#allocation8 + $0x28] sm:$0xff]  ;;  %v6384_v38 = vld [vmem:[#allocation8 + $0x30] sm:$0xff] }
 0x182   : > { %7333 = vst [vmem:[#allocation49_spill] sm:$0xff] %v6380_v36  ;;  %7334 = vst [vmem:[#allocation50_spill] sm:$0xff] %v6382_v37  ;;  %v6386_v39 = vld [vmem:[#allocation8 + $0x38] sm:$0xff]  ;;  %v6388_v40 = vld [vmem:[#allocation8 + $0x40] sm:$0xff] }
 0x183   : > { %7335 = vst [vmem:[#allocation51_spill] sm:$0xff] %v6384_v38  ;;  %7336 = vst [vmem:[#allocation52_spill] sm:$0xff] %v6386_v39  ;;  %v6390_v41 = vld [vmem:[#allocation8 + $0x48] sm:$0xff]  ;;  %v6392_v42 = vld [vmem:[#allocation8 + $0x50] sm:$0xff] }
 0x184   : > { %7337 = vst [vmem:[#allocation53_spill] sm:$0xff] %v6388_v40  ;;  %7338 = vst [vmem:[#allocation54_spill] sm:$0xff] %v6390_v41  ;;  %v6394_v43 = vld [vmem:[#allocation8 + $0x58] sm:$0xff]  ;;  %v6396_v44 = vld [vmem:[#allocation8 + $0x60] sm:$0xff] }
 0x185   : > { %7339 = vst [vmem:[#allocation55_spill] sm:$0xff] %v6392_v42  ;;  %7340 = vst [vmem:[#allocation56_spill] sm:$0xff] %v6394_v43  ;;  %v6398_v45 = vld [vmem:[#allocation8 + $0x68] sm:$0xff]  ;;  %v6400_v46 = vld [vmem:[#allocation8 + $0x70] sm:$0xff] }
 0x186   : > { %v6402_v47 = vld [vmem:[#allocation8 + $0x78] sm:$0xff]  ;;  %v6404_v48 = vld [vmem:[#allocation10] sm:$0xff]  ;;  %v6406_v49 = vld [vmem:[#allocation10 + $0x8] sm:$0xff] }
 0x187   : > { %v6408_v50 = vld [vmem:[#allocation10 + $0x10] sm:$0xff]  ;;  %v6410_v51 = vld [vmem:[#allocation10 + $0x18] sm:$0xff]  ;;  %v6412_v52 = vld [vmem:[#allocation10 + $0x20] sm:$0xff] }
 0x188   : > { %v6414_v53 = vld [vmem:[#allocation10 + $0x28] sm:$0xff]  ;;  %v6416_v54 = vld [vmem:[#allocation10 + $0x30] sm:$0xff]  ;;  %v6418_v55 = vld [vmem:[#allocation10 + $0x38] sm:$0xff] }
 0x189   : > { %7341 = vst [vmem:[#allocation57_spill] sm:$0xff] %v6414_v53  ;;  %7342 = vst [vmem:[#allocation58_spill] sm:$0xff] %v6416_v54  ;;  %v6420_v56 = vld [vmem:[#allocation10 + $0x40] sm:$0xff]  ;;  %v6422_v57 = vld [vmem:[#allocation10 + $0x48] sm:$0xff] }
 0x18a   : > { %7343 = vst [vmem:[#allocation59_spill] sm:$0xff] %v6418_v55  ;;  %7344 = vst [vmem:[#allocation60_spill] sm:$0xff] %v6420_v56  ;;  %v6424_v58 = vld [vmem:[#allocation10 + $0x50] sm:$0xff]  ;;  %v6426_v59 = vld [vmem:[#allocation10 + $0x58] sm:$0xff] }
 0x18b   : > { %7345 = vst [vmem:[#allocation61_spill] sm:$0xff] %v6422_v57  ;;  %7346 = vst [vmem:[#allocation62_spill] sm:$0xff] %v6424_v58  ;;  %v6428_v60 = vld [vmem:[#allocation10 + $0x60] sm:$0xff]  ;;  %v6430_v61 = vld [vmem:[#allocation10 + $0x68] sm:$0xff] }
 0x18c   : > { %7347 = vst [vmem:[#allocation63_spill] sm:$0xff] %v6426_v59  ;;  %7348 = vst [vmem:[#allocation64_spill] sm:$0xff] %v6428_v60  ;;  %v6432_v62 = vld [vmem:[#allocation10 + $0x70] sm:$0xff]  ;;  %v6434_v63 = vld [vmem:[#allocation10 + $0x78] sm:$0xff] }
 0x18d   : > { %7349 = vst [vmem:[#allocation65_spill] sm:$0xff] %v6430_v61  ;;  %7350 = vst [vmem:[#allocation66_spill] sm:$0xff] %v6432_v62  ;;  %v6436_v53 = vld [vmem:[#allocation11] sm:$0xff]  ;;  %v6438_v54 = vld [vmem:[#allocation13] sm:$0xff] }
 0x18e   : > { %7351 = vst [vmem:[#allocation67_spill] sm:$0xff] %v6434_v63  ;;  %7352 = vst [vmem:[#allocation68_spill] sm:$0xff] %v6436_v53  ;;  %v6440_v55 = vld [vmem:[#allocation14] sm:$0xff]  ;;  %v6442_v56 = vld [vmem:[#allocation14 + $0x8] sm:$0xff] }
 0x18f   : > { %7353 = vst [vmem:[#allocation69_spill] sm:$0xff] %v6438_v54  ;;  %7354 = vst [vmem:[#allocation70_spill] sm:$0xff] %v6440_v55  ;;  %v6444_v57 = vld [vmem:[#allocation14 + $0x10] sm:$0xff]  ;;  %v6446_v58 = vld [vmem:[#allocation14 + $0x18] sm:$0xff] }
 0x190   : > { %7355 = vst [vmem:[#allocation71_spill] sm:$0xff] %v6442_v56  ;;  %7356 = vst [vmem:[#allocation72_spill] sm:$0xff] %v6444_v57  ;;  %v6448_v59 = vld [vmem:[#allocation14 + $0x20] sm:$0xff]  ;;  %v6450_v60 = vld [vmem:[#allocation14 + $0x28] sm:$0xff] }
 0x191   : > { %7357 = vst [vmem:[#allocation73_spill] sm:$0xff] %v6446_v58  ;;  %7358 = vst [vmem:[#allocation74_spill] sm:$0xff] %v6448_v59  ;;  %v6452_v61 = vld [vmem:[#allocation14 + $0x30] sm:$0xff]  ;;  %v6454_v62 = vld [vmem:[#allocation14 + $0x38] sm:$0xff] }
 0x192   : > { %7359 = vst [vmem:[#allocation75_spill] sm:$0xff] %v6450_v60  ;;  %7360 = vst [vmem:[#allocation76_spill] sm:$0xff] %v6452_v61  ;;  %v6456_v63 = vld [vmem:[#allocation14 + $0x40] sm:$0xff]  ;;  %v6458_v53 = vld [vmem:[#allocation14 + $0x48] sm:$0xff] }
 0x193   : > { %7361 = vst [vmem:[#allocation77_spill] sm:$0xff] %v6454_v62  ;;  %7362 = vst [vmem:[#allocation78_spill] sm:$0xff] %v6456_v63  ;;  %v6460_v54 = vld [vmem:[#allocation14 + $0x50] sm:$0xff]  ;;  %v6462_v55 = vld [vmem:[#allocation14 + $0x58] sm:$0xff] }
 0x194   : > { %7363 = vst [vmem:[#allocation79_spill] sm:$0xff] %v6458_v53  ;;  %7364 = vst [vmem:[#allocation80_spill] sm:$0xff] %v6460_v54  ;;  %v6464_v56 = vld [vmem:[#allocation14 + $0x60] sm:$0xff]  ;;  %v6466_v57 = vld [vmem:[#allocation14 + $0x68] sm:$0xff] }
 0x195   : > { %7365 = vst [vmem:[#allocation81_spill] sm:$0xff] %v6462_v55  ;;  %7366 = vst [vmem:[#allocation82_spill] sm:$0xff] %v6464_v56  ;;  %v6468_v58 = vld [vmem:[#allocation14 + $0x70] sm:$0xff]  ;;  %v6470_v59 = vld [vmem:[#allocation14 + $0x78] sm:$0xff] }
 0x196   : > { %7367 = vst [vmem:[#allocation83_spill] sm:$0xff] %v6466_v57  ;;  %7368 = vst [vmem:[#allocation84_spill] sm:$0xff] %v6468_v58  ;;  %v6472_v60 = vld [vmem:[#allocation16] sm:$0xff]  ;;  %v6474_v61 = vld [vmem:[#allocation16 + $0x8] sm:$0xff] }
 0x197   : > { %7369 = vst [vmem:[#allocation85_spill] sm:$0xff] %v6470_v59  ;;  %7370 = vst [vmem:[#allocation86_spill] sm:$0xff] %v6472_v60  ;;  %v6476_v62 = vld [vmem:[#allocation16 + $0x10] sm:$0xff]  ;;  %v6478_v63 = vld [vmem:[#allocation16 + $0x18] sm:$0xff] }
 0x198   : > { %7371 = vst [vmem:[#allocation87_spill] sm:$0xff] %v6474_v61  ;;  %7372 = vst [vmem:[#allocation88_spill] sm:$0xff] %v6476_v62  ;;  %v6480_v53 = vld [vmem:[#allocation16 + $0x20] sm:$0xff]  ;;  %v6482_v54 = vld [vmem:[#allocation16 + $0x28] sm:$0xff] }
 0x199   : > { %7373 = vst [vmem:[#allocation89_spill] sm:$0xff] %v6478_v63  ;;  %7374 = vst [vmem:[#allocation90_spill] sm:$0xff] %v6480_v53  ;;  %v6484_v55 = vld [vmem:[#allocation16 + $0x30] sm:$0xff]  ;;  %v6486_v56 = vld [vmem:[#allocation16 + $0x38] sm:$0xff] }
 0x19a   : > { %7375 = vst [vmem:[#allocation91_spill] sm:$0xff] %v6482_v54  ;;  %7376 = vst [vmem:[#allocation92_spill] sm:$0xff] %v6484_v55  ;;  %v6488_v57 = vld [vmem:[#allocation16 + $0x40] sm:$0xff]  ;;  %v6490_v58 = vld [vmem:[#allocation16 + $0x48] sm:$0xff] }
 0x19b   : > { %7377 = vst [vmem:[#allocation93_spill] sm:$0xff] %v6486_v56  ;;  %7378 = vst [vmem:[#allocation94_spill] sm:$0xff] %v6488_v57  ;;  %v6492_v59 = vld [vmem:[#allocation16 + $0x50] sm:$0xff]  ;;  %v6494_v60 = vld [vmem:[#allocation16 + $0x58] sm:$0xff] }
 0x19c   : > { %7379 = vst [vmem:[#allocation95_spill] sm:$0xff] %v6490_v58  ;;  %7380 = vst [vmem:[#allocation96_spill] sm:$0xff] %v6492_v59  ;;  %v6496_v61 = vld [vmem:[#allocation16 + $0x60] sm:$0xff]  ;;  %v6498_v62 = vld [vmem:[#allocation16 + $0x68] sm:$0xff] }
 0x19d   : > { %7381 = vst [vmem:[#allocation97_spill] sm:$0xff] %v6494_v60  ;;  %7382 = vst [vmem:[#allocation98_spill] sm:$0xff] %v6496_v61  ;;  %v6500_v63 = vld [vmem:[#allocation16 + $0x70] sm:$0xff]  ;;  %v6502_v53 = vld [vmem:[#allocation16 + $0x78] sm:$0xff] }
 0x19e   : > { %7383 = vst [vmem:[#allocation99_spill] sm:$0xff] %v6498_v62  ;;  %7384 = vst [vmem:[#allocation100_spill] sm:$0xff] %v6500_v63  ;;  %v6507_v56 = vld [vmem:[%s7386_s17] sm:$0xff]  ;;  %v6512_v58 = vld [vmem:[%s7386_s17 + $0x8] sm:$0xff] }
 0x19f   : > { %7385 = vst [vmem:[#allocation101_spill] sm:$0xff] %v6502_v53  ;;  %7387 = vst [vmem:[#allocation102_spill] sm:$0xff] %v6507_v56  ;;  %v6517_v61 = vld [vmem:[%s7389_s14] sm:$0xff]  ;;  %v6522_v63 = vld [vmem:[%s7389_s14 + $0x8] sm:$0xff] }
 0x1a0   : > { %7388 = vst [vmem:[#allocation103_spill] sm:$0xff] %v6512_v58  ;;  %7390 = vst [vmem:[#allocation104_spill] sm:$0xff] %v6517_v61  ;;  %v6524_v53 = vld [vmem:[#allocation17] sm:$0xff]  ;;  %v6526_v62 = vld [vmem:[#allocation17 + $0x8] sm:$0xff] }
 0x1a1   : > { %7391 = vst [vmem:[#allocation105_spill] sm:$0xff] %v6522_v63  ;;  %7392 = vst [vmem:[#allocation106_spill] sm:$0xff] %v6524_v53  ;;  %v6528_v56 = vld [vmem:[#allocation17 + $0x10] sm:$0xff]  ;;  %v6530_v60 = vld [vmem:[#allocation17 + $0x18] sm:$0xff] }
 0x1a2   : > { %7393 = vst [vmem:[#allocation107_spill] sm:$0xff] %v6526_v62  ;;  %7394 = vst [vmem:[#allocation108_spill] sm:$0xff] %v6528_v56  ;;  %v6532_v59 = vld [vmem:[#allocation17 + $0x20] sm:$0xff]  ;;  %v6534_v58 = vld [vmem:[#allocation17 + $0x28] sm:$0xff] }
 0x1a3   : > { %7395 = vst [vmem:[#allocation109_spill] sm:$0xff] %v6530_v60  ;;  %7396 = vst [vmem:[#allocation110_spill] sm:$0xff] %v6532_v59  ;;  %v6536_v57 = vld [vmem:[#allocation17 + $0x30] sm:$0xff]  ;;  %v6538_v61 = vld [vmem:[#allocation17 + $0x38] sm:$0xff] }
 0x1a4   : > { %7397 = vst [vmem:[#allocation111_spill] sm:$0xff] %v6534_v58  ;;  %7398 = vst [vmem:[#allocation112_spill] sm:$0xff] %v6536_v57  ;;  %v6540_v55 = vld [vmem:[#allocation17 + $0x40] sm:$0xff]  ;;  %v6542_v54 = vld [vmem:[#allocation17 + $0x48] sm:$0xff] }
 0x1a5   : > { %7399 = vst [vmem:[#allocation113_spill] sm:$0xff] %v6538_v61  ;;  %7400 = vst [vmem:[#allocation114_spill] sm:$0xff] %v6540_v55  ;;  %v6544_v63 = vld [vmem:[#allocation17 + $0x50] sm:$0xff]  ;;  %v6546_v53 = vld [vmem:[#allocation17 + $0x58] sm:$0xff] }
 0x1a6   : > { %7401 = vst [vmem:[#allocation115_spill] sm:$0xff] %v6542_v54  ;;  %7402 = vst [vmem:[#allocation116_spill] sm:$0xff] %v6544_v63  ;;  %v6548_v62 = vld [vmem:[#allocation17 + $0x60] sm:$0xff]  ;;  %v6550_v56 = vld [vmem:[#allocation17 + $0x68] sm:$0xff] }
 0x1a7   : > { %7403 = vst [vmem:[#allocation117_spill] sm:$0xff] %v6546_v53  ;;  %7404 = vst [vmem:[#allocation118_spill] sm:$0xff] %v6548_v62  ;;  %v6552_v60 = vld [vmem:[#allocation17 + $0x70] sm:$0xff]  ;;  %v6554_v59 = vld [vmem:[#allocation17 + $0x78] sm:$0xff] }
 0x1a8   : > { %7405 = vst [vmem:[#allocation119_spill] sm:$0xff] %v6550_v56  ;;  %7406 = vst [vmem:[#allocation120_spill] sm:$0xff] %v6552_v60  ;;  %v6556_v58 = vld [vmem:[#allocation19] sm:$0xff]  ;;  %v6558_v61 = vld [vmem:[#allocation19 + $0x8] sm:$0xff] }
 0x1a9   : > { %7407 = vst [vmem:[#allocation121_spill] sm:$0xff] %v6554_v59  ;;  %7408 = vst [vmem:[#allocation122_spill] sm:$0xff] %v6556_v58  ;;  %v6560_v55 = vld [vmem:[#allocation19 + $0x10] sm:$0xff]  ;;  %v6562_v54 = vld [vmem:[#allocation19 + $0x18] sm:$0xff] }
 0x1aa   : > { %7409 = vst [vmem:[#allocation123_spill] sm:$0xff] %v6558_v61  ;;  %7410 = vst [vmem:[#allocation124_spill] sm:$0xff] %v6560_v55  ;;  %v6564_v63 = vld [vmem:[#allocation19 + $0x20] sm:$0xff]  ;;  %v6566_v53 = vld [vmem:[#allocation19 + $0x28] sm:$0xff] }
 0x1ab   : > { %7411 = vst [vmem:[#allocation125_spill] sm:$0xff] %v6562_v54  ;;  %7412 = vst [vmem:[#allocation126_spill] sm:$0xff] %v6564_v63  ;;  %v6568_v62 = vld [vmem:[#allocation19 + $0x30] sm:$0xff]  ;;  %v6570_v56 = vld [vmem:[#allocation19 + $0x38] sm:$0xff] }
 0x1ac   : > { %v6572_v60 = vld [vmem:[#allocation19 + $0x40] sm:$0xff]  ;;  %v6574_v59 = vld [vmem:[#allocation19 + $0x48] sm:$0xff]  ;;  %v6576_v58 = vld [vmem:[#allocation19 + $0x50] sm:$0xff] }
 0x1ad   : > { %7413 = vst [vmem:[#allocation127_spill] sm:$0xff] %v6572_v60  ;;  %7414 = vst [vmem:[#allocation128_spill] sm:$0xff] %v6574_v59  ;;  %v6578_v61 = vld [vmem:[#allocation19 + $0x58] sm:$0xff]  ;;  %v6580_v57 = vld [vmem:[#allocation19 + $0x60] sm:$0xff] }
 0x1ae   : > { %7415 = vst [vmem:[#allocation129_spill] sm:$0xff] %v6576_v58  ;;  %7416 = vst [vmem:[#allocation130_spill] sm:$0xff] %v6578_v61  ;;  %v6582_v55 = vld [vmem:[#allocation19 + $0x68] sm:$0xff]  ;;  %v6584_v54 = vld [vmem:[#allocation19 + $0x70] sm:$0xff] }
 0x1af   : > { %7417 = vst [vmem:[#allocation131_spill] sm:$0xff] %v6580_v57  ;;  %7418 = vst [vmem:[#allocation132_spill] sm:$0xff] %v6582_v55  ;;  %v6586_v63 = vld [vmem:[#allocation19 + $0x78] sm:$0xff] }
 0x1b0   : > { %7419 = vst [vmem:[#allocation133_spill] sm:$0xff] %v6584_v54  ;;  %7420 = vst [vmem:[#allocation134_spill] sm:$0xff] %v6586_v63 }
 0x1b1 LB: >> { %v7422_v0 = vld [vmem:[#allocation32_spill] sm:$0xff]  ;;  %v7423_v32 = vld [vmem:[#allocation45_spill] sm:$0xff]  ;;  %v7424_v33 = vld [vmem:[#allocation46_spill] sm:$0xff]  ;;  %s3167_s2 = sshll.u32 %s5825_s27, 7  ;;  %vm5841_vm0 = vmmov 0   ;;  %s3168_s28 = sshll.u32 %s5825_s27, 3  ;;  %s5825_s27 = sphi %s6596_s27, %s781_s27  }
 0x1b2   : >> { %3688 = vmatprep.mubr.f32.mxu1 %v7422_v0  ;;  %v6604_v63 = vpack.c.bf16 %v7424_v33, %v7423_v32  ;;  %v7425_v34 = vld [vmem:[#allocation47_spill] sm:$0xff]  ;;  %v7426_v35 = vld [vmem:[#allocation48_spill] sm:$0xff]  ;;  %s6613_s20 = scalar_lea.vmem %s6280_s10, %s3167_s2 [#allocation2]  ;;  %v7427_v36 = vld [vmem:[#allocation49_spill] sm:$0xff]  ;;  %s2259_s24 = scalar_lea.vmem %s6590_s13, %s3168_s28 [#allocation20] }
 0x1b3   : >> { %v6608_v54 = vpack.c.bf16 %v7426_v35, %v7425_v34  ;;  %v784_v0 = vld [vmem:[%s6613_s20] sm:$0xff]  ;;  %v785_v32 = vld [vmem:[%s6613_s20 + $0x8] sm:$0xff]  ;;  %v786_v33 = vld [vmem:[%s6613_s20 + $0x10] sm:$0xff]  ;;  %s3169_s25 = sshll.u32 %s5825_s27, 4  ;;  %s781_s27 = sadd.s32 1, %s5825_s27  }
 0x1b4   : >> { %4617 = vmatprep.subr.bf16.mxu0 %v6604_v63  ;;  %v7428_v37 = vld [vmem:[#allocation50_spill] sm:$0xff]  ;;  %v4552_v35 = vpack.c.bf16 %v785_v32, %v784_v0  ;;  %v787_v55 = vld [vmem:[%s6613_s20 + $0x18] sm:$0xff]  ;;  %v789_v58 = vld [vmem:[%s6613_s20 + $0x28] sm:$0xff]  ;;  %s2886_s0 = scalar_lea.vmem %s6594_s1, %s3169_s25 [#allocation21]  ;;  %p778_p13 = scmp.ge.s32.totalorder %s781_s27, 4  }
 0x1b5   : >> { %4619 = vmatpush3.bf16.msra.mxu0 %v6604_v63  ;;  %v6622_v34 = vpack.c.bf16 %v7428_v37, %v7427_v36  ;;  %v4556_v57 = vpack.c.bf16 %v787_v55, %v786_v33  ;;  %v788_v61 = vld [vmem:[%s6613_s20 + $0x20] sm:$0xff]  ;;  %v7429_v38 = vld [vmem:[#allocation51_spill] sm:$0xff]  ;;  %v7430_v39 = vld [vmem:[#allocation52_spill] sm:$0xff]  ;;  %s3181_s2 = sshll.u32 (%p778_p13), %s5943_s19, 9  ;;  %s2908_s3 = sshll.u32 (%p778_p13), %s6590_s13, 4  ;;  %s7152_s3 = int_to_ptr.vmem [resolvable:$true] %s2908_s3 }
 0x1b6   : >> { %4621 = vmatprep.subr.bf16.mxu0 %v6608_v54  ;;  %4553 = vmatprep.subr.bf16.mxu1 %v4552_v35  ;;  %v6631_v59 = vpack.c.bf16 %v7430_v39, %v7429_v38  ;;  %v4560_v36 = vpack.c.bf16 %v789_v58, %v788_v61  ;;  %v790_v37 = vld [vmem:[%s6613_s20 + $0x30] sm:$0xff]  ;;  %v791_v0 = vld [vmem:[%s6613_s20 + $0x38] sm:$0xff]  ;;  %v7432_v41 = vld [vmem:[#allocation54_spill] sm:$0xff]  ;;  %s5699_s4 = scalar_lea.vmem (%p778_p13), %s7152_s3, 512  ;;  %p7527_p2 = scmp.ne.s32.totalorder (%p778_p13), %s7299_s22, 0 }
 0x1b7   : >> { %4555 = vmatpush3.bf16.msra.mxu1 %v4552_v35  ;;  %v7431_v40 = vld [vmem:[#allocation53_spill] sm:$0xff]  ;;  %v4564_v33 = vpack.c.bf16 %v791_v0, %v790_v37  ;;  %v792_v55 = vld [vmem:[%s6613_s20 + $0x40] sm:$0xff]  ;;  %v793_v38 = vld [vmem:[%s6613_s20 + $0x48] sm:$0xff]  ;;  %v6655_v37 = vpack.c.bf16 %v6398_v45, %v6396_v44  ;;  %p5700_p0 = scmp.ne.s32.totalorder (%p778_p13), %s7152_s3, %s5699_s4  ;;  %s5843_s10 = smov (%p778_p13), [#allocation20]  }
 0x1b8   : >> { %4557 = vmatprep.subr.bf16.mxu1 %v4556_v57  ;;  %v6639_v32 = vpack.c.bf16 %v7432_v41, %v7431_v40  ;;  %v7433_v42 = vld [vmem:[#allocation55_spill] sm:$0xff]  ;;  %v7434_v43 = vld [vmem:[#allocation56_spill] sm:$0xff]  ;;  %v4568_v61 = vpack.c.bf16 %v793_v38, %v792_v55  ;;  %v795_v40 = vld [vmem:[%s6613_s20 + $0x58] sm:$0xff]  ;;  %v6663_v38 = vpack.c.bf16 %v6402_v47, %v6400_v46  ;;  %s5703_s27 = sshll.u32 (%p778_p13), %s5843_s10, 4  ;;  %s5704_s27 = int_to_ptr.vmem [resolvable:$false] %s5703_s27 }
 0x1b9   : >> { %4623 = vmatpush3.bf16.msra.mxu0 %v6608_v54  ;;  %v6647_v58 = vpack.c.bf16 %v7434_v43, %v7433_v42  ;;  %v794_v39 = vld [vmem:[%s6613_s20 + $0x50] sm:$0xff]  ;;  %v796_v41 = vld [vmem:[%s6613_s20 + $0x60] sm:$0xff]  ;;  %v797_v42 = vld [vmem:[%s6613_s20 + $0x68] sm:$0xff]  ;;  %p5701_p8 = pnand (%p778_p13), %p5700_p0, %p7527_p2  ;;  %s5705_s5 = scalar_lea.vmem (%p778_p13), %s5704_s27, 1024 }
 0x1ba   : >> { %4625 = vmatprep.subr.bf16.mxu0 %v6622_v34  ;;  %v4572_v0 = vpack.c.bf16 %v795_v40, %v794_v39  ;;  %v4576_v55 = vpack.c.bf16 %v797_v42, %v796_v41  ;;  %v798_v43 = vld [vmem:[%s6613_s20 + $0x70] sm:$0xff]  ;;  %v799_v60 = vld [vmem:[%s6613_s20 + $0x78] sm:$0xff]  ;;  %v7436_v2 = vld [vmem:[#allocation34_spill] sm:$0xff]  ;;  %p5706_p10 = scmp.lt.s32.totalorder (%p778_p13), %s7152_s3, %s5704_s27  ;;  %p5707_p11 = scmp.lt.s32.totalorder (%p778_p13), %s5705_s5, %s5699_s4 }
 0x1bb   : >> { %4559 = vmatpush3.bf16.msra.mxu1 %v4556_v57  ;;  %v4580_v39 = vpack.c.bf16 %v799_v60, %v798_v43  ;;  %v7435_v1 = vld [vmem:[#allocation33_spill] sm:$0xff]  ;;  %v7437_v3 = vld [vmem:[#allocation35_spill] sm:$0xff]  ;;  %v7438_v4 = vld [vmem:[#allocation36_spill] sm:$0xff]  ;;  %p5702_p4 = pneg (%p778_p13), %p5701_p8 }
 0x1bc   : >> { %4561 = vmatprep.subr.bf16.mxu1 %v4560_v36  ;;  %v7439_v5 = vld [vmem:[#allocation37_spill] sm:$0xff]  ;;  %v7440_v6 = vld [vmem:[#allocation38_spill] sm:$0xff]  ;;  %v7441_v7 = vld [vmem:[#allocation39_spill] sm:$0xff]  ;;  %p5708_p3 = por (%p778_p13), %p5707_p11, %p5706_p10 }
 0x1bd   : >> { %4627 = vmatpush3.bf16.msra.mxu0 %v6622_v34  ;;  %v7442_v8 = vld [vmem:[#allocation40_spill] sm:$0xff]  ;;  %v7443_v9 = vld [vmem:[#allocation41_spill] sm:$0xff]  ;;  %v7444_v10 = vld [vmem:[#allocation42_spill] sm:$0xff] }
 0x1be   : >> { %4629 = vmatprep.subr.bf16.mxu0 %v6631_v59  ;;  %v7445_v11 = vld [vmem:[#allocation43_spill] sm:$0xff]  ;;  %v7446_v12 = vld [vmem:[#allocation44_spill] sm:$0xff]  ;;  %v7447_v40 = vld [vmem:[#allocation57_spill] sm:$0xff]  ;;  %p5709_p5 = pnand (%p778_p13), %p5708_p3, %p5702_p4 }
 0x1bf   : >> { %4563 = vmatpush3.bf16.msra.mxu1 %v4560_v36  ;;  %v6716_v41 = vpack.c.bf16 %v7447_v40, %v6412_v52  ;;  %v7448_v42 = vld [vmem:[#allocation58_spill] sm:$0xff]  ;;  %v7449_v43 = vld [vmem:[#allocation59_spill] sm:$0xff]  ;;  %v7450_v60 = vld [vmem:[#allocation60_spill] sm:$0xff] }
 0x1c0   : >> { %4565 = vmatprep.subr.bf16.mxu1 %v4564_v33  ;;  %v7454_v40 = vld [vmem:[#allocation64_spill] sm:$0xff] }
 0x1c1   : >> { %4631 = vmatpush3.bf16.msra.mxu0 %v6631_v59 }
 0x1c2   : >> { %4633 = vmatprep.subr.bf16.mxu0 %v6639_v32 }
 0x1c3   : >> { %4567 = vmatpush3.bf16.msra.mxu1 %v4564_v33 }
 0x1c4   : >> { %4569 = vmatprep.subr.bf16.mxu1 %v4568_v61 }
 0x1c5   : >> { %4635 = vmatpush3.bf16.msra.mxu0 %v6639_v32 }
 0x1c6   : >> { %4637 = vmatprep.subr.bf16.mxu0 %v6647_v58 }
 0x1c7   : >> { %4571 = vmatpush3.bf16.msra.mxu1 %v4568_v61 }
 0x1c8   : >> { %4573 = vmatprep.subr.bf16.mxu1 %v4572_v0 }
 0x1c9   : >> { %4639 = vmatpush3.bf16.msra.mxu0 %v6647_v58 }
 0x1ca   : >> { %4641 = vmatprep.subr.bf16.mxu0 %v6655_v37 }
 0x1cb   : >> { %4575 = vmatpush3.bf16.msra.mxu1 %v4572_v0 }
 0x1cc   : >> { %4577 = vmatprep.subr.bf16.mxu1 %v4576_v55 }
 0x1cd   : >> { %4643 = vmatpush3.bf16.msra.mxu0 %v6655_v37 }
 0x1ce   : >> { %4645 = vmatprep.subr.bf16.mxu0 %v6663_v38 }
 0x1cf   : >> { %4579 = vmatpush3.bf16.msra.mxu1 %v4576_v55 }
 0x1d0   : >> { %4581 = vmatprep.subr.bf16.mxu1 %v4580_v39 }
 0x1d1   : >> { %4647 = vmatpush3.bf16.msra.mxu0 %v6663_v38 }
 0x1d2   : >> { %4681 = vmatprep.subr.bf16.mxu0 %v6604_v63 }
 0x1d3   : >> { %4583 = vmatpush3.bf16.msra.mxu1 %v4580_v39 }
 0x1d4   : >> { %4585 = vmatprep.subr.bf16.mxu1 %v4552_v35 }
 0x1d6   : >> { %3689 = vmatmul.mubr.f32.vlgmr.msra.gmra.mrb[0].mxu1 %v7435_v1 }
 0x1d7   : >> { %4587 = vmatpush3.bf16.msra.mxu1 %v4552_v35  ;;  %3691 = vmatprep.mubr.f32.mxu1 %v7436_v2  ;;  %v6704_v35 = vpack.c.bf16 %v6406_v49, %v6404_v48 }
 0x1d8   : >> { %4589 = vmatprep.subr.bf16.mxu1 %v4556_v57 }
 0x1da   : >> { %3692 = vmatmul.mubr.f32.gmra.mrb[2].mxu1 %v7437_v3 }
 0x1db   : >> { %4591 = vmatpush3.bf16.msra.mxu1 %v4556_v57  ;;  %3694 = vmatprep.mubr.f32.mxu1 %v7438_v4  ;;  %v6722_v57 = vpack.c.bf16 %v7449_v43, %v7448_v42  ;;  %v7455_v42 = vld [vmem:[#allocation65_spill] sm:$0xff] }
 0x1dc   : >> { %4593 = vmatprep.subr.bf16.mxu1 %v4560_v36  ;;  %v6740_v43 = vpack.c.bf16 %v7455_v42, %v7454_v40 }
 0x1de   : >> { %3695 = vmatmul.mubr.f32.gmra.mrb[4].mxu1 %v7439_v5 }
 0x1df   : >> { %4595 = vmatpush3.bf16.msra.mxu1 %v4560_v36  ;;  %3697 = vmatprep.mubr.f32.mxu1 %v7440_v6  ;;  %v6710_v36 = vpack.c.bf16 %v6410_v51, %v6408_v50 }
 0x1e0   : >> { %4597 = vmatprep.subr.bf16.mxu1 %v4564_v33 }
 0x1e2   : >> { %3698 = vmatmul.mubr.f32.gmra.mrb[6].mxu1 %v7441_v7 }
 0x1e3   : >> { %4599 = vmatpush3.bf16.msra.mxu1 %v4564_v33  ;;  %3700 = vmatprep.mubr.f32.mxu1 %v7442_v8  ;;  %v7451_v33 = vld [vmem:[#allocation61_spill] sm:$0xff] }
 0x1e4   : >> { %4601 = vmatprep.subr.bf16.mxu1 %v4568_v61 }
 0x1e6   : >> { %3701 = vmatmul.mubr.f32.gmra.mrb[8].mxu1 %v7443_v9 }
 0x1e7   : >> { %4603 = vmatpush3.bf16.msra.mxu1 %v4568_v61  ;;  %3703 = vmatprep.mubr.f32.mxu1 %v7444_v10  ;;  %v6728_v61 = vpack.c.bf16 %v7451_v33, %v7450_v60  ;;  %v7456_v60 = vld [vmem:[#allocation66_spill] sm:$0xff]  ;;  %v7457_v33 = vld [vmem:[#allocation67_spill] sm:$0xff] }
 0x1e8   : >> { %4605 = vmatprep.subr.bf16.mxu1 %v4572_v0  ;;  %v6746_v1 = vpack.c.bf16 %v7457_v33, %v7456_v60 }
 0x1ea   : >> { %3704 = vmatmul.mubr.f32.gmra.mrb[10].mxu1 %v7445_v11  ;;  %v7479_v11 = vld [vmem:[#allocation89_spill] sm:$0xff] }
 0x1eb   : >> { %4607 = vmatpush3.bf16.msra.mxu1 %v4572_v0  ;;  %3706 = vmatprep.mubr.f32.mxu1 %v7446_v12  ;;  %v7452_v0 = vld [vmem:[#allocation62_spill] sm:$0xff] }
 0x1ec   : >> { %4609 = vmatprep.subr.bf16.mxu1 %v4576_v55 }
 0x1ee   : >> { %3707 = vmatmul.mubr.f32.gmra.mrb[12].mxu1 %v6334_v13 }
 0x1ef   : >> { %4611 = vmatpush3.bf16.msra.mxu1 %v4576_v55  ;;  %3709 = vmatprep.mubr.f32.mxu1 %v6336_v14  ;;  %v7453_v55 = vld [vmem:[#allocation63_spill] sm:$0xff] }
 0x1f0   : >> { %4613 = vmatprep.subr.bf16.mxu1 %v4580_v39 }
 0x1f2   : >> { %3710 = vmatmul.mubr.f32.gmra.mrb[14].mxu1 %v6338_v15 }
 0x1f3   : >> { %4615 = vmatpush3.bf16.msra.mxu1 %v4580_v39  ;;  %3744 = vmatprep.mubr.f32.mxu1 %v6340_v16  ;;  %v6734_v39 = vpack.c.bf16 %v7453_v55, %v7452_v0 }
 0x1f4   : >> { %4649 = vmatprep.subr.bf16.mxu1 %v6704_v35 }
 0x1f6   : >> { %3745 = vmatmul.mubr.f32.vlgmr.msra.gmra.mrb[16].mxu1 %v6342_v17 }
 0x1f7   : >> { %3747 = vmatprep.mubr.f32.mxu1 %v6344_v18  ;;  %4651 = vmatpush3.bf16.msra.mxu1 %v6704_v35 }
 0x1f8   : >> { %4653 = vmatprep.subr.bf16.mxu1 %v6710_v36 }
 0x1fa   : >> { %3748 = vmatmul.mubr.f32.gmra.mrb[18].mxu1 %v6346_v19 }
 0x1fb   : >> { %3750 = vmatprep.mubr.f32.mxu1 %v6348_v20  ;;  %4655 = vmatpush3.bf16.msra.mxu1 %v6710_v36 }
 0x1fc   : >> { %4657 = vmatprep.subr.bf16.mxu1 %v6716_v41 }
 0x1fe   : >> { %3751 = vmatmul.mubr.f32.gmra.mrb[20].mxu1 %v6350_v21 }
 0x1ff   : >> { %3753 = vmatprep.mubr.f32.mxu1 %v6352_v22  ;;  %4659 = vmatpush3.bf16.msra.mxu1 %v6716_v41 }
 0x200   : >> { %4661 = vmatprep.subr.bf16.mxu1 %v6722_v57 }
 0x202   : >> { %3754 = vmatmul.mubr.f32.gmra.mrb[22].mxu1 %v6354_v23 }
 0x203   : >> { %3756 = vmatprep.mubr.f32.mxu1 %v6356_v24  ;;  %4663 = vmatpush3.bf16.msra.mxu1 %v6722_v57 }
 0x204   : >> { %4665 = vmatprep.subr.bf16.mxu1 %v6728_v61 }
 0x206   : >> { %3757 = vmatmul.mubr.f32.gmra.mrb[24].mxu1 %v6358_v25 }
 0x207   : >> { %3759 = vmatprep.mubr.f32.mxu1 %v6360_v26  ;;  %4667 = vmatpush3.bf16.msra.mxu1 %v6728_v61 }
 0x208   : >> { %4669 = vmatprep.subr.bf16.mxu1 %v6734_v39 }
 0x20a   : >> { %3760 = vmatmul.mubr.f32.gmra.mrb[26].mxu1 %v6362_v27 }
 0x20b   : >> { %3762 = vmatprep.mubr.f32.mxu1 %v6364_v28  ;;  %4671 = vmatpush3.bf16.msra.mxu1 %v6734_v39 }
 0x20c   : >> { %4673 = vmatprep.subr.bf16.mxu1 %v6740_v43 }
 0x20e   : >> { %3763 = vmatmul.mubr.f32.gmra.mrb[28].mxu1 %v6366_v29 }
 0x20f   : >> { %3765 = vmatprep.mubr.f32.mxu1 %v6368_v30  ;;  %4675 = vmatpush3.bf16.msra.mxu1 %v6740_v43 }
 0x210   : >> { %4677 = vmatprep.subr.bf16.mxu1 %v6746_v1 }
 0x212   : >> { %3766 = vmatmul.mubr.f32.gmra.mrb[30].mxu1 %v6370_v31 }
 0x213   : >> { %4679 = vmatpush3.bf16.msra.mxu1 %v6746_v1 }
 0x2a9   : >> { %v6750_v0 = vpop.f32.mrb[0].mxu1 }
 0x2aa   : >> { %v6752_v55 = vpop.f32.mrb[1].mxu1 }
 0x2ab   : >> { %3800 = vmatprep.mubr.f32.mxu0 %v6752_v55 }
 0x2ac   : >> { %3801 = vmatmul.mubr.f32.vlgmr.msra.gmra.mrb[0].mxu0 %v6750_v0 }
 0x2ad   : >> { %v6756_v40 = vpop.f32.mrb[2].mxu1  ;;  %4683 = vmatpush3.bf16.msra.mxu0 %v6604_v63 }
 0x2ae   : >> { %v6759_v42 = vpop.f32.mrb[3].mxu1  ;;  %4685 = vmatprep.subr.bf16.mxu0 %v6608_v54 }
 0x2af   : >> { %3803 = vmatprep.mubr.f32.mxu0 %v6759_v42 }
 0x2b0   : >> { %3804 = vmatmul.mubr.f32.gmra.mrb[2].mxu0 %v6756_v40 }
 0x2b1   : >> { %v6764_v60 = vpop.f32.mrb[4].mxu1  ;;  %4687 = vmatpush3.bf16.msra.mxu0 %v6608_v54 }
 0x2b2   : >> { %v6767_v33 = vpop.f32.mrb[5].mxu1  ;;  %4689 = vmatprep.subr.bf16.mxu0 %v6622_v34 }
 0x2b3   : >> { %3806 = vmatprep.mubr.f32.mxu0 %v6767_v33 }
 0x2b4   : >> { %3807 = vmatmul.mubr.f32.gmra.mrb[4].mxu0 %v6764_v60 }
 0x2b5   : >> { %v6772_v63 = vpop.f32.mrb[6].mxu1  ;;  %4691 = vmatpush3.bf16.msra.mxu0 %v6622_v34 }
 0x2b6   : >> { %v6775_v2 = vpop.f32.mrb[7].mxu1  ;;  %4693 = vmatprep.subr.bf16.mxu0 %v6631_v59 }
 0x2b7   : >> { %3809 = vmatprep.mubr.f32.mxu0 %v6775_v2 }
 0x2b8   : >> { %3810 = vmatmul.mubr.f32.gmra.mrb[6].mxu0 %v6772_v63 }
 0x2b9   : >> { %v6780_v54 = vpop.f32.mrb[8].mxu1  ;;  %4695 = vmatpush3.bf16.msra.mxu0 %v6631_v59 }
 0x2ba   : >> { %v6783_v3 = vpop.f32.mrb[9].mxu1  ;;  %4697 = vmatprep.subr.bf16.mxu0 %v6639_v32 }
 0x2bb   : >> { %3812 = vmatprep.mubr.f32.mxu0 %v6783_v3 }
 0x2bc   : >> { %3813 = vmatmul.mubr.f32.gmra.mrb[8].mxu0 %v6780_v54 }
 0x2bd   : >> { %v6788_v34 = vpop.f32.mrb[10].mxu1  ;;  %4699 = vmatpush3.bf16.msra.mxu0 %v6639_v32 }
 0x2be   : >> { %v6791_v4 = vpop.f32.mrb[11].mxu1  ;;  %4701 = vmatprep.subr.bf16.mxu0 %v6647_v58 }
 0x2bf   : >> { %3815 = vmatprep.mubr.f32.mxu0 %v6791_v4 }
 0x2c0   : >> { %3816 = vmatmul.mubr.f32.gmra.mrb[10].mxu0 %v6788_v34 }
 0x2c1   : >> { %v6796_v59 = vpop.f32.mrb[12].mxu1  ;;  %4703 = vmatpush3.bf16.msra.mxu0 %v6647_v58 }
 0x2c2   : >> { %v6799_v5 = vpop.f32.mrb[13].mxu1  ;;  %4705 = vmatprep.subr.bf16.mxu0 %v6655_v37 }
 0x2c3   : >> { %3818 = vmatprep.mubr.f32.mxu0 %v6799_v5 }
 0x2c4   : >> { %3819 = vmatmul.mubr.f32.gmra.mrb[12].mxu0 %v6796_v59 }
 0x2c5   : >> { %v6804_v32 = vpop.f32.mrb[14].mxu1  ;;  %4707 = vmatpush3.bf16.msra.mxu0 %v6655_v37 }
 0x2c6   : >> { %v6807_v6 = vpop.f32.mrb[15].mxu1  ;;  %4709 = vmatprep.subr.bf16.mxu0 %v6663_v38 }
 0x2c7   : >> { %3821 = vmatprep.mubr.f32.mxu0 %v6807_v6 }
 0x2c8   : >> { %3822 = vmatmul.mubr.f32.gmra.mrb[14].mxu0 %v6804_v32 }
 0x2c9   : >> { %v3746_v58 = vpop.f32.mrb[16].mxu1  ;;  %4711 = vmatpush3.bf16.msra.mxu0 %v6663_v38 }
 0x2ca   : >> { %v1011_v7 = vpop.f32.mrb[17].mxu1  ;;  %4713 = vmatprep.subr.bf16.mxu0 %v6704_v35 }
 0x2cb   : >> { %3856 = vmatprep.mubr.f32.mxu1 %v1011_v7  ;;  %3912 = vmatprep.mubr.f32.mxu0 %v1011_v7 }
 0x2cc   : >> { %3857 = vmatmul.mubr.f32.vlgmr.msra.gmra.mrb[32].mxu1 %v3746_v58  ;;  %3913 = vmatmul.mubr.f32.vlgmr.msra.gmra.mrb[16].mxu0 %v3746_v58 }
 0x2cd   : >> { %v3749_v8 = vpop.f32.mrb[18].mxu1  ;;  %4715 = vmatpush3.bf16.msra.mxu0 %v6704_v35 }
 0x2ce   : >> { %v1021_v37 = vpop.f32.mrb[19].mxu1  ;;  %4717 = vmatprep.subr.bf16.mxu0 %v6710_v36 }
 0x2cf   : >> { %3859 = vmatprep.mubr.f32.mxu1 %v1021_v37  ;;  %3915 = vmatprep.mubr.f32.mxu0 %v1021_v37 }
 0x2d0   : >> { %3860 = vmatmul.mubr.f32.gmra.mrb[34].mxu1 %v3749_v8  ;;  %3916 = vmatmul.mubr.f32.gmra.mrb[18].mxu0 %v3749_v8 }
 0x2d1   : >> { %v3752_v9 = vpop.f32.mrb[20].mxu1  ;;  %4719 = vmatpush3.bf16.msra.mxu0 %v6710_v36 }
 0x2d2   : >> { %v1031_v38 = vpop.f32.mrb[21].mxu1  ;;  %4721 = vmatprep.subr.bf16.mxu0 %v6716_v41 }
 0x2d3   : >> { %3862 = vmatprep.mubr.f32.mxu1 %v1031_v38  ;;  %3918 = vmatprep.mubr.f32.mxu0 %v1031_v38 }
 0x2d4   : >> { %3863 = vmatmul.mubr.f32.gmra.mrb[36].mxu1 %v3752_v9  ;;  %3919 = vmatmul.mubr.f32.gmra.mrb[20].mxu0 %v3752_v9 }
 0x2d5   : >> { %v3755_v7 = vpop.f32.mrb[22].mxu1  ;;  %4723 = vmatpush3.bf16.msra.mxu0 %v6716_v41 }
 0x2d6   : >> { %v1041_v35 = vpop.f32.mrb[23].mxu1  ;;  %4725 = vmatprep.subr.bf16.mxu0 %v6722_v57 }
 0x2d7   : >> { %3865 = vmatprep.mubr.f32.mxu1 %v1041_v35  ;;  %3921 = vmatprep.mubr.f32.mxu0 %v1041_v35 }
 0x2d8   : >> { %3866 = vmatmul.mubr.f32.gmra.mrb[38].mxu1 %v3755_v7  ;;  %3922 = vmatmul.mubr.f32.gmra.mrb[22].mxu0 %v3755_v7 }
 0x2d9   : >> { %v3758_v8 = vpop.f32.mrb[24].mxu1  ;;  %4727 = vmatpush3.bf16.msra.mxu0 %v6722_v57 }
 0x2da   : >> { %v1051_v36 = vpop.f32.mrb[25].mxu1  ;;  %4729 = vmatprep.subr.bf16.mxu0 %v6728_v61 }
 0x2db   : >> { %3868 = vmatprep.mubr.f32.mxu1 %v1051_v36  ;;  %3924 = vmatprep.mubr.f32.mxu0 %v1051_v36 }
 0x2dc   : >> { %3869 = vmatmul.mubr.f32.gmra.mrb[40].mxu1 %v3758_v8  ;;  %3925 = vmatmul.mubr.f32.gmra.mrb[24].mxu0 %v3758_v8 }
 0x2dd   : >> { %v3761_v9 = vpop.f32.mrb[26].mxu1  ;;  %4731 = vmatpush3.bf16.msra.mxu0 %v6728_v61 }
 0x2de   : >> { %v1061_v41 = vpop.f32.mrb[27].mxu1  ;;  %4733 = vmatprep.subr.bf16.mxu0 %v6734_v39 }
 0x2df   : >> { %3871 = vmatprep.mubr.f32.mxu1 %v1061_v41  ;;  %3927 = vmatprep.mubr.f32.mxu0 %v1061_v41 }
 0x2e0   : >> { %3872 = vmatmul.mubr.f32.gmra.mrb[42].mxu1 %v3761_v9  ;;  %3928 = vmatmul.mubr.f32.gmra.mrb[26].mxu0 %v3761_v9 }
 0x2e1   : >> { %v3764_v58 = vpop.f32.mrb[28].mxu1  ;;  %4735 = vmatpush3.bf16.msra.mxu0 %v6734_v39 }
 0x2e2   : >> { %v1071_v57 = vpop.f32.mrb[29].mxu1  ;;  %4737 = vmatprep.subr.bf16.mxu0 %v6740_v43 }
 0x2e3   : >> { %3874 = vmatprep.mubr.f32.mxu1 %v1071_v57  ;;  %3930 = vmatprep.mubr.f32.mxu0 %v1071_v57 }
 0x2e4   : >> { %3875 = vmatmul.mubr.f32.gmra.mrb[44].mxu1 %v3764_v58  ;;  %3931 = vmatmul.mubr.f32.gmra.mrb[28].mxu0 %v3764_v58 }
 0x2e5   : >> { %v3767_v37 = vpop.f32.mrb[30].mxu1  ;;  %4739 = vmatpush3.bf16.msra.mxu0 %v6740_v43 }
 0x2e6   : >> { %v1081_v61 = vpop.f32.mrb[31].mxu1  ;;  %4741 = vmatprep.subr.bf16.mxu0 %v6746_v1 }
 0x2e7   : >> { %3877 = vmatprep.mubr.f32.mxu1 %v1081_v61  ;;  %3933 = vmatprep.mubr.f32.mxu0 %v1081_v61 }
 0x2e8   : >> { %3878 = vmatmul.mubr.f32.gmra.mrb[46].mxu1 %v3767_v37  ;;  %3934 = vmatmul.mubr.f32.gmra.mrb[30].mxu0 %v3767_v37 }
 0x2e9   : >> { %4743 = vmatpush3.bf16.msra.mxu0 %v6746_v1  ;;  %3968 = vmatprep.mubr.f32.mxu0 %v6752_v55  ;;  %v5840_v1 = vmov 0.0|0.0  }
 0x2ea   : >> { %4744 = vmatprep.subr.bf16.mxu1 %v5840_v1  ;;  %4792 = vmatprep.subr.bf16.mxu0 %v5840_v1 }
 0x2ec   : >> { %3969 = vmatmul.mubr.f32.vlgmr.msra.gmra.mrb[16].mxu0 %v6750_v0 }
 0x2ed   : >> { %3971 = vmatprep.mubr.f32.mxu0 %v6759_v42 }
 0x2f0   : >> { %3972 = vmatmul.mubr.f32.gmra.mrb[18].mxu0 %v6756_v40 }
 0x2f1   : >> { %3974 = vmatprep.mubr.f32.mxu0 %v6767_v33 }
 0x2f4   : >> { %3975 = vmatmul.mubr.f32.gmra.mrb[20].mxu0 %v6764_v60 }
 0x2f5   : >> { %3977 = vmatprep.mubr.f32.mxu0 %v6775_v2  ;;  %v7268_v2 = vmov 0.0  }
 0x2f6   : >> { %4024 = vmatprep.mubr.msk.f32.mxu1 %vm5841_vm0, %v7268_v2 }
 0x2f8   : >> { %3978 = vmatmul.mubr.f32.gmra.mrb[22].mxu0 %v6772_v63 }
 0x2f9   : >> { %3980 = vmatprep.mubr.f32.mxu0 %v6783_v3 }
 0x2fc   : >> { %3981 = vmatmul.mubr.f32.gmra.mrb[24].mxu0 %v6780_v54 }
 0x2fd   : >> { %3983 = vmatprep.mubr.f32.mxu0 %v6791_v4 }
 0x300   : >> { %3984 = vmatmul.mubr.f32.gmra.mrb[26].mxu0 %v6788_v34 }
 0x301   : >> { %3986 = vmatprep.mubr.f32.mxu0 %v6799_v5 }
 0x304   : >> { %3987 = vmatmul.mubr.f32.gmra.mrb[28].mxu0 %v6796_v59 }
 0x305   : >> { %3989 = vmatprep.mubr.f32.mxu0 %v6807_v6 }
 0x308   : >> { %3990 = vmatmul.mubr.f32.gmra.mrb[30].mxu0 %v6804_v32 }
 0x309   : >> { %4094 = vmatprep.mubr.msk.f32.mxu0 %vm5841_vm0, %v7268_v2 }
 0x37f   : >> { %v3802_v3 = vpop.f32.mrb[0].mxu0 }
 0x380   : >> { %v1156_v4 = vpop.f32.mrb[1].mxu0 }
 0x383   : >> { %v3805_v5 = vpop.f32.mrb[2].mxu0 }
 0x384   : >> { %v1166_v39 = vpop.f32.mrb[3].mxu0 }
 0x387   : >> { %v3808_v6 = vpop.f32.mrb[4].mxu0 }
 0x388   : >> { %v1176_v43 = vpop.f32.mrb[5].mxu0 }
 0x38b   : >> { %v3811_v0 = vpop.f32.mrb[6].mxu0 }
 0x38c   : >> { %v1186_v55 = vpop.f32.mrb[7].mxu0 }
 0x38f   : >> { %v3814_v40 = vpop.f32.mrb[8].mxu0 }
 0x390   : >> { %v1196_v42 = vpop.f32.mrb[9].mxu0 }
 0x393   : >> { %v3817_v60 = vpop.f32.mrb[10].mxu0 }
 0x394   : >> { %v1206_v33 = vpop.f32.mrb[11].mxu0 }
 0x397   : >> { %v6851_v63 = vpop.f32.mrb[12].mxu0 }
 0x398   : >> { %v1216_v54 = vpop.f32.mrb[13].mxu0 }
 0x39b   : >> { %v6853_v34 = vpop.f32.mrb[14].mxu0 }
 0x39c   : >> { %v6855_v59 = vpop.f32.mrb[15].mxu0 }
 0x39f   : >> { %v3858_v32 = vpop.f32.mrb[32].mxu1 }
 0x3a0   : >> { %v1381_v38 = vsub.f32 %v3802_v3, %v3858_v32  ;;  %v1301_v7 = vpop.f32.mrb[33].mxu1 }
 0x3a1   : >> { %v1380_v35 = vsub.f32 %v1156_v4, %v1301_v7 }
 0x3a3   : >> { %v6857_v8 = vpack.c.bf16 %v1381_v38, %v1380_v35  ;;  %v3861_v36 = vpop.f32.mrb[34].mxu1 }
 0x3a4   : >> { %v1383_v9 = vsub.f32 %v3805_v5, %v3861_v36  ;;  %v1311_v41 = vpop.f32.mrb[35].mxu1 }
 0x3a5   : >> { %v1382_v58 = vsub.f32 %v1166_v39, %v1311_v41  ;;  %4746 = vmatpush3.bf16.msra.mxu1 %v6857_v8  ;;  %4794 = vmatpush3.bf16.msra.mxu0 %v6857_v8 }
 0x3a6   : >> { %4747 = vmatprep.subr.bf16.mxu1 %v5840_v1  ;;  %4795 = vmatprep.subr.bf16.mxu0 %v5840_v1 }
 0x3a7   : >> { %v6863_v57 = vpack.c.bf16 %v1383_v9, %v1382_v58  ;;  %v3864_v37 = vpop.f32.mrb[36].mxu1 }
 0x3a8   : >> { %v1385_v61 = vsub.f32 %v3808_v6, %v3864_v37  ;;  %v1321_v3 = vpop.f32.mrb[37].mxu1 }
 0x3a9   : >> { %v1384_v4 = vsub.f32 %v1176_v43, %v1321_v3  ;;  %4749 = vmatpush3.bf16.msra.mxu1 %v6863_v57  ;;  %4797 = vmatpush3.bf16.msra.mxu0 %v6863_v57 }
 0x3aa   : >> { %4750 = vmatprep.subr.bf16.mxu1 %v5840_v1  ;;  %4798 = vmatprep.subr.bf16.mxu0 %v5840_v1 }
 0x3ab   : >> { %v6869_v5 = vpack.c.bf16 %v1385_v61, %v1384_v4  ;;  %v3867_v39 = vpop.f32.mrb[38].mxu1 }
 0x3ac   : >> { %v1387_v32 = vsub.f32 %v3811_v0, %v3867_v39  ;;  %v1331_v38 = vpop.f32.mrb[39].mxu1 }
 0x3ad   : >> { %v1386_v7 = vsub.f32 %v1186_v55, %v1331_v38  ;;  %4752 = vmatpush3.bf16.msra.mxu1 %v6869_v5  ;;  %4800 = vmatpush3.bf16.msra.mxu0 %v6869_v5 }
 0x3ae   : >> { %4753 = vmatprep.subr.bf16.mxu1 %v5840_v1  ;;  %4801 = vmatprep.subr.bf16.mxu0 %v5840_v1 }
 0x3af   : >> { %v6875_v6 = vpack.c.bf16 %v1387_v32, %v1386_v7  ;;  %v3870_v43 = vpop.f32.mrb[40].mxu1 }
 0x3b0   : >> { %v1389_v35 = vsub.f32 %v3814_v40, %v3870_v43  ;;  %v1341_v36 = vpop.f32.mrb[41].mxu1 }
 0x3b1   : >> { %v1388_v9 = vsub.f32 %v1196_v42, %v1341_v36  ;;  %4755 = vmatpush3.bf16.msra.mxu1 %v6875_v6  ;;  %4803 = vmatpush3.bf16.msra.mxu0 %v6875_v6  ;;  %v7459_v36 = vld [vmem:[#allocation69_spill] sm:$0xff] }
 0x3b2   : >> { %4756 = vmatprep.subr.bf16.mxu1 %v5840_v1  ;;  %4804 = vmatprep.subr.bf16.mxu0 %v5840_v1 }
 0x3b3   : >> { %v6881_v0 = vpack.c.bf16 %v1389_v35, %v1388_v9  ;;  %v3873_v55 = vpop.f32.mrb[42].mxu1  ;;  %v7458_v35 = vld [vmem:[#allocation68_spill] sm:$0xff] }
 0x3b4   : >> { %v1391_v41 = vsub.f32 %v3817_v60, %v3873_v55  ;;  %v1351_v58 = vpop.f32.mrb[43].mxu1 }
 0x3b5   : >> { %v1390_v37 = vsub.f32 %v1206_v33, %v1351_v58  ;;  %4758 = vmatpush3.bf16.msra.mxu1 %v6881_v0  ;;  %4806 = vmatpush3.bf16.msra.mxu0 %v6881_v0 }
 0x3b6   : >> { %4759 = vmatprep.subr.bf16.mxu1 %v5840_v1  ;;  %4807 = vmatprep.subr.bf16.mxu0 %v5840_v1 }
 0x3b7   : >> { %v6887_v40 = vpack.c.bf16 %v1391_v41, %v1390_v37  ;;  %v3876_v42 = vpop.f32.mrb[44].mxu1 }
 0x3b8   : >> { %v1393_v61 = vsub.f32 %v6851_v63, %v3876_v42  ;;  %v1361_v3 = vpop.f32.mrb[45].mxu1 }
 0x3b9   : >> { %v1392_v4 = vsub.f32 %v1216_v54, %v1361_v3  ;;  %4761 = vmatpush3.bf16.msra.mxu1 %v6887_v40  ;;  %4809 = vmatpush3.bf16.msra.mxu0 %v6887_v40 }
 0x3ba   : >> { %4762 = vmatprep.subr.bf16.mxu1 %v5840_v1  ;;  %4810 = vmatprep.subr.bf16.mxu0 %v5840_v1 }
 0x3bb   : >> { %v6894_v60 = vpack.c.bf16 %v1393_v61, %v1392_v4  ;;  %v3879_v33 = vpop.f32.mrb[46].mxu1 }
 0x3bc   : >> { %v1395_v39 = vsub.f32 %v6853_v34, %v3879_v33  ;;  %v1371_v32 = vpop.f32.mrb[47].mxu1 }
 0x3bd   : >> { %v1394_v38 = vsub.f32 %v6855_v59, %v1371_v32  ;;  %4764 = vmatpush3.bf16.msra.mxu1 %v6894_v60  ;;  %4812 = vmatpush3.bf16.msra.mxu0 %v6894_v60 }
 0x3be   : >> { %4765 = vmatprep.subr.bf16.mxu1 %v5840_v1  ;;  %4813 = vmatprep.subr.bf16.mxu0 %v5840_v1 }
 0x3bf   : >> { %v6902_v63 = vpack.c.bf16 %v1395_v39, %v1394_v38  ;;  %v3970_v54 = vpop.f32.mrb[16].mxu0 }
 0x3c0   : >> { %v1607_v7 = vpop.f32.mrb[17].mxu0 }
 0x3c1   : >> { %v6904_v43 = vpack.c.bf16 %v3970_v54, %v1607_v7  ;;  %4767 = vmatpush3.bf16.msra.mxu1 %v6902_v63  ;;  %4815 = vmatpush3.bf16.msra.mxu0 %v6902_v63 }
 0x3c2   : >> { %4768 = vmatprep.subr.bf16.mxu1 %v5840_v1  ;;  %4816 = vmatprep.subr.bf16.mxu0 %v5840_v1 }
 0x3c3   : >> { %v3973_v34 = vpop.f32.mrb[18].mxu0 }
 0x3c4   : >> { %v1617_v59 = vpop.f32.mrb[19].mxu0  ;;  %4025 = vmatmul.mubr.f32.vlgmr.msra.gmra.mrb[48].mxu1 %v7458_v35  ;;  %4095 = vmatmul.mubr.f32.vlgmr.msra.gmra.mrb[32].mxu0 %v7459_v36 }
 0x3c5   : >> { %v6912_v9 = vpack.c.bf16 %v3973_v34, %v1617_v59  ;;  %4770 = vmatpush3.bf16.msra.mxu1 %v6904_v43  ;;  %4818 = vmatpush3.bf16.msra.mxu0 %v6904_v43 }
 0x3c6   : >> { %4771 = vmatprep.subr.bf16.mxu1 %v5840_v1  ;;  %4819 = vmatprep.subr.bf16.mxu0 %v5840_v1 }
 0x3c7   : >> { %v3976_v55 = vpop.f32.mrb[20].mxu0  ;;  %4059 = vmatprep.mubr.msk.f32.mxu1 %vm5841_vm0, %v7268_v2  ;;  %4129 = vmatprep.mubr.msk.f32.mxu0 %vm5841_vm0, %v7268_v2 }
 0x3c8   : >> { %v1627_v41 = vpop.f32.mrb[21].mxu0 }
 0x3c9   : >> { %v6922_v58 = vpack.c.bf16 %v3976_v55, %v1627_v41  ;;  %4773 = vmatpush3.bf16.msra.mxu1 %v6912_v9  ;;  %4821 = vmatpush3.bf16.msra.mxu0 %v6912_v9 }
 0x3ca   : >> { %4774 = vmatprep.subr.bf16.mxu1 %v5840_v1  ;;  %4822 = vmatprep.subr.bf16.mxu0 %v5840_v1 }
 0x3cb   : >> { %v3979_v37 = vpop.f32.mrb[22].mxu0 }
 0x3cc   : >> { %v1637_v42 = vpop.f32.mrb[23].mxu0 }
 0x3cd   : >> { %v6928_v61 = vpack.c.bf16 %v3979_v37, %v1637_v42  ;;  %4776 = vmatpush3.bf16.msra.mxu1 %v6922_v58  ;;  %4824 = vmatpush3.bf16.msra.mxu0 %v6922_v58  ;;  %v7460_v37 = vld [vmem:[#allocation70_spill] sm:$0xff]  ;;  %v7461_v42 = vld [vmem:[#allocation71_spill] sm:$0xff] }
 0x3ce   : >> { %4777 = vmatprep.subr.bf16.mxu1 %v5840_v1  ;;  %4825 = vmatprep.subr.bf16.mxu0 %v5840_v1 }
 0x3cf   : >> { %v3982_v3 = vpop.f32.mrb[24].mxu0 }
 0x3d0   : >> { %v1647_v4 = vpop.f32.mrb[25].mxu0 }
 0x3d1   : >> { %v6934_v33 = vpack.c.bf16 %v3982_v3, %v1647_v4  ;;  %4779 = vmatpush3.bf16.msra.mxu1 %v6928_v61  ;;  %4827 = vmatpush3.bf16.msra.mxu0 %v6928_v61  ;;  %v4841_v3 = vpack.c.bf16 %v7461_v42, %v7460_v37  ;;  %v7462_v4 = vld [vmem:[#allocation72_spill] sm:$0xff]  ;;  %v7467_v37 = vld [vmem:[#allocation77_spill] sm:$0xff] }
 0x3d2   : >> { %4780 = vmatprep.subr.bf16.mxu1 %v5840_v1  ;;  %4828 = vmatprep.subr.bf16.mxu0 %v5840_v1 }
 0x3d3   : >> { %v3985_v39 = vpop.f32.mrb[26].mxu0 }
 0x3d4   : >> { %v1657_v32 = vpop.f32.mrb[27].mxu0 }
 0x3d5   : >> { %v6940_v38 = vpack.c.bf16 %v3985_v39, %v1657_v32  ;;  %4782 = vmatpush3.bf16.msra.mxu1 %v6934_v33  ;;  %4830 = vmatpush3.bf16.msra.mxu0 %v6934_v33  ;;  %v7463_v39 = vld [vmem:[#allocation73_spill] sm:$0xff] }
 0x3d6   : >> { %4783 = vmatprep.subr.bf16.mxu1 %v5840_v1  ;;  %4831 = vmatprep.subr.bf16.mxu0 %v5840_v1  ;;  %v4844_v32 = vpack.c.bf16 %v7463_v39, %v7462_v4  ;;  %v7469_v4 = vld [vmem:[#allocation79_spill] sm:$0xff] }
 0x3d7   : >> { %v3988_v54 = vpop.f32.mrb[28].mxu0 }
 0x3d8   : >> { %v1667_v7 = vpop.f32.mrb[29].mxu0 }
 0x3d9   : >> { %v6946_v34 = vpack.c.bf16 %v3988_v54, %v1667_v7  ;;  %4785 = vmatpush3.bf16.msra.mxu1 %v6940_v38  ;;  %4833 = vmatpush3.bf16.msra.mxu0 %v6940_v38  ;;  %v7464_v54 = vld [vmem:[#allocation74_spill] sm:$0xff]  ;;  %v7465_v7 = vld [vmem:[#allocation75_spill] sm:$0xff] }
 0x3da   : >> { %4786 = vmatprep.subr.bf16.mxu1 %v5840_v1  ;;  %4834 = vmatprep.subr.bf16.mxu0 %v5840_v1 }
 0x3db   : >> { %v3991_v59 = vpop.f32.mrb[30].mxu0 }
 0x3dc   : >> { %v1677_v55 = vpop.f32.mrb[31].mxu0 }
 0x3dd   : >> { %v6952_v41 = vpack.c.bf16 %v3991_v59, %v1677_v55  ;;  %4788 = vmatpush3.bf16.msra.mxu1 %v6946_v34  ;;  %4836 = vmatpush3.bf16.msra.mxu0 %v6946_v34  ;;  %v4847_v59 = vpack.c.bf16 %v7465_v7, %v7464_v54  ;;  %v7466_v55 = vld [vmem:[#allocation76_spill] sm:$0xff]  ;;  %v7471_v54 = vld [vmem:[#allocation81_spill] sm:$0xff] }
 0x3de   : >> { %4789 = vmatprep.subr.bf16.mxu1 %v5840_v1  ;;  %4837 = vmatprep.subr.bf16.mxu0 %v5840_v1  ;;  %v4850_v42 = vpack.c.bf16 %v7467_v37, %v7466_v55  ;;  %v7473_v55 = vld [vmem:[#allocation83_spill] sm:$0xff] }
 0x3e1   : >> { %4791 = vmatpush3.bf16.msra.mxu1 %v6952_v41  ;;  %4839 = vmatpush3.bf16.msra.mxu0 %v6952_v41 }
 0x3e2   : >> { %4888 = vmatprep.subr.bf16.mxu0 %v5840_v1  ;;  %4840 = vmatprep.subr.bf16.mxu1 %v5840_v1 }
 0x3e4   : >> { %4060 = vmatmul.mubr.f32.vlgmr.msra.gmra.mrb[50].mxu1 %v7459_v36  ;;  %4130 = vmatmul.mubr.f32.vlgmr.msra.gmra.mrb[32].mxu0 %v7458_v35 }
 0x3e5   : >> { %4234 = vmatprep.mubr.msk.f32.mxu0 %vm5841_vm0, %v7268_v2  ;;  %4164 = vmatprep.mubr.msk.f32.mxu1 %vm5841_vm0, %v7268_v2 }
 0x3e6   : >> { %4890 = vmatpush3.bf16.msra.mxu0 %v4841_v3  ;;  %4842 = vmatpush3.bf16.msra.mxu1 %v4841_v3  ;;  %v7468_v3 = vld [vmem:[#allocation78_spill] sm:$0xff] }
 0x3e7   : >> { %4891 = vmatprep.subr.bf16.mxu0 %v5840_v1  ;;  %4843 = vmatprep.subr.bf16.mxu1 %v5840_v1  ;;  %v4853_v39 = vpack.c.bf16 %v7469_v4, %v7468_v3  ;;  %v7475_v3 = vld [vmem:[#allocation85_spill] sm:$0xff] }
 0x3ea   : >> { %4893 = vmatpush3.bf16.msra.mxu0 %v4844_v32  ;;  %4845 = vmatpush3.bf16.msra.mxu1 %v4844_v32  ;;  %v7470_v32 = vld [vmem:[#allocation80_spill] sm:$0xff] }
 0x3eb   : >> { %4894 = vmatprep.subr.bf16.mxu0 %v5840_v1  ;;  %4846 = vmatprep.subr.bf16.mxu1 %v5840_v1  ;;  %v4856_v7 = vpack.c.bf16 %v7471_v54, %v7470_v32  ;;  %v7476_v54 = vld [vmem:[#allocation86_spill] sm:$0xff] }
 0x3ee   : >> { %4896 = vmatpush3.bf16.msra.mxu0 %v4847_v59  ;;  %4848 = vmatpush3.bf16.msra.mxu1 %v4847_v59  ;;  %v7472_v59 = vld [vmem:[#allocation82_spill] sm:$0xff] }
 0x3ef   : >> { %4897 = vmatprep.subr.bf16.mxu0 %v5840_v1  ;;  %4849 = vmatprep.subr.bf16.mxu1 %v5840_v1  ;;  %v4859_v37 = vpack.c.bf16 %v7473_v55, %v7472_v59 }
 0x3f2   : >> { %4899 = vmatpush3.bf16.msra.mxu0 %v4850_v42  ;;  %4851 = vmatpush3.bf16.msra.mxu1 %v4850_v42  ;;  %v7474_v42 = vld [vmem:[#allocation84_spill] sm:$0xff] }
 0x3f3   : >> { %4900 = vmatprep.subr.bf16.mxu0 %v5840_v1  ;;  %4852 = vmatprep.subr.bf16.mxu1 %v5840_v1  ;;  %v4862_v4 = vpack.c.bf16 %v7475_v3, %v7474_v42  ;;  %v7478_v3 = vld [vmem:[#allocation88_spill] sm:$0xff] }
 0x3f4   : >> { %v4868_v12 = vpack.c.bf16 %v7479_v11, %v7478_v3  ;;  %v7483_v11 = vld [vmem:[#allocation92_spill] sm:$0xff]  ;;  %v7488_v3 = vld [vmem:[#allocation97_spill] sm:$0xff] }
 0x3f6   : >> { %4902 = vmatpush3.bf16.msra.mxu0 %v4853_v39  ;;  %4854 = vmatpush3.bf16.msra.mxu1 %v4853_v39 }
 0x3f7   : >> { %4903 = vmatprep.subr.bf16.mxu0 %v5840_v1  ;;  %4855 = vmatprep.subr.bf16.mxu1 %v5840_v1 }
 0x3fa   : >> { %4905 = vmatpush3.bf16.msra.mxu0 %v4856_v7  ;;  %4857 = vmatpush3.bf16.msra.mxu1 %v4856_v7  ;;  %v7477_v7 = vld [vmem:[#allocation87_spill] sm:$0xff] }
 0x3fb   : >> { %4906 = vmatprep.subr.bf16.mxu0 %v5840_v1  ;;  %4858 = vmatprep.subr.bf16.mxu1 %v5840_v1  ;;  %v4865_v59 = vpack.c.bf16 %v7477_v7, %v7476_v54  ;;  %v7484_v54 = vld [vmem:[#allocation93_spill] sm:$0xff] }
 0x3fc   : >> { %v4874_v7 = vpack.c.bf16 %v7484_v54, %v7483_v11  ;;  %v7491_v11 = vld [vmem:[#allocation100_spill] sm:$0xff]  ;;  %v7492_v54 = vld [vmem:[#allocation101_spill] sm:$0xff] }
 0x3fe   : >> { %4908 = vmatpush3.bf16.msra.mxu0 %v4859_v37  ;;  %4860 = vmatpush3.bf16.msra.mxu1 %v4859_v37 }
 0x3ff   : >> { %4909 = vmatprep.subr.bf16.mxu0 %v5840_v1  ;;  %4861 = vmatprep.subr.bf16.mxu1 %v5840_v1 }
 0x402   : >> { %4911 = vmatpush3.bf16.msra.mxu0 %v4862_v4  ;;  %4863 = vmatpush3.bf16.msra.mxu1 %v4862_v4  ;;  %v7480_v4 = vmov 0.0  }
 0x403   : >> { %4912 = vmatprep.subr.bf16.mxu0 %v5840_v1  ;;  %4864 = vmatprep.subr.bf16.mxu1 %v5840_v1 }
 0x497   : >> { %v1752_v39 = vpop.f32.mrb[48].mxu1 }
 0x498   : >> { %v4026_v32 = vpop.f32.mrb[49].mxu1 }
 0x4b7   : >> { %v1822_v55 = vpop.f32.mrb[50].mxu1  ;;  %v1963_v37 = vpop.f32.mrb[32].mxu0 }
 0x4b8   : >> { %v1826_v2 = vsub.f32 %v1752_v39, %v1822_v55  ;;  %v4061_v10 = vpop.f32.mrb[51].mxu1  ;;  %v4131_v42 = vpop.f32.mrb[33].mxu0  ;;  %4235 = vmatmul.mubr.f32.vlgmr.msra.gmra.mrb[34].mxu0 %v1963_v37  ;;  %v7482_v39 = vld [vmem:[#allocation91_spill] sm:$0xff] }
 0x4b9   : >> { %4914 = vmatpush3.bf16.msra.mxu0 %v4865_v59  ;;  %4269 = vmatprep.mubr.msk.f32.mxu0 %vm5841_vm0, %v7480_v4  ;;  %v7481_v10 = vld [vmem:[#allocation90_spill] sm:$0xff]  ;;  %v7486_v55 = vld [vmem:[#allocation95_spill] sm:$0xff] }
 0x4ba   : >> { %4165 = vmatmul.mubr.f32.vlgmr.msra.gmra.mrb[52].mxu1 %v1826_v2  ;;  %4915 = vmatprep.subr.bf16.mxu0 %v5840_v1  ;;  %v4871_v32 = vpack.c.bf16 %v7482_v39, %v7481_v10  ;;  %v7489_v10 = vld [vmem:[#allocation98_spill] sm:$0xff]  ;;  %v7490_v39 = vld [vmem:[#allocation99_spill] sm:$0xff] }
 0x4bb   : >> { %4866 = vmatpush3.bf16.msra.mxu1 %v4865_v59  ;;  %4199 = vmatprep.mubr.msk.f32.mxu1 %vm5841_vm0, %v7480_v4  ;;  %v7485_v59 = vld [vmem:[#allocation94_spill] sm:$0xff] }
 0x4bc   : >> { %4867 = vmatprep.subr.bf16.mxu1 %v5840_v1  ;;  %v4877_v42 = vpack.c.bf16 %v7486_v55, %v7485_v59  ;;  %v7493_v59 = vld [vmem:[#allocation104_spill] sm:$0xff]  ;;  %v7494_v55 = vld [vmem:[#allocation102_spill] sm:$0xff] }
 0x4bd   : >> { %4917 = vmatpush3.bf16.msra.mxu0 %v4868_v12 }
 0x4be   : >> { %4918 = vmatprep.subr.bf16.mxu0 %v5840_v1 }
 0x4bf   : >> { %4869 = vmatpush3.bf16.msra.mxu1 %v4868_v12  ;;  %v7487_v12 = vld [vmem:[#allocation96_spill] sm:$0xff] }
 0x4c0   : >> { %4870 = vmatprep.subr.bf16.mxu1 %v5840_v1  ;;  %v4880_v4 = vpack.c.bf16 %v7488_v3, %v7487_v12  ;;  %v7509_v12 = vld [vmem:[#allocation118_spill] sm:$0xff]  ;;  %v7510_v3 = vld [vmem:[#allocation119_spill] sm:$0xff] }
 0x4c1   : >> { %4920 = vmatpush3.bf16.msra.mxu0 %v4871_v32 }
 0x4c2   : >> { %4921 = vmatprep.subr.bf16.mxu0 %v5840_v1 }
 0x4c3   : >> { %4872 = vmatpush3.bf16.msra.mxu1 %v4871_v32  ;;  %v4883_v32 = vpack.c.bf16 %v7490_v39, %v7489_v10  ;;  %v7511_v10 = vld [vmem:[#allocation120_spill] sm:$0xff]  ;;  %v7512_v39 = vld [vmem:[#allocation121_spill] sm:$0xff] }
 0x4c4   : >> { %4873 = vmatprep.subr.bf16.mxu1 %v5840_v1 }
 0x4c5   : >> { %4923 = vmatpush3.bf16.msra.mxu0 %v4874_v7 }
 0x4c6   : >> { %4924 = vmatprep.subr.bf16.mxu0 %v5840_v1 }
 0x4c7   : >> { %4875 = vmatpush3.bf16.msra.mxu1 %v4874_v7  ;;  %v4886_v7 = vpack.c.bf16 %v7492_v54, %v7491_v11  ;;  %v7513_v11 = vld [vmem:[#allocation122_spill] sm:$0xff]  ;;  %v7514_v54 = vld [vmem:[#allocation123_spill] sm:$0xff] }
 0x4c8   : >> { %4876 = vmatprep.subr.bf16.mxu1 %v5840_v1 }
 0x4c9   : >> { %4926 = vmatpush3.bf16.msra.mxu0 %v4877_v42 }
 0x4ca   : >> { %4927 = vmatprep.subr.bf16.mxu0 %v5840_v1 }
 0x4cb   : >> { %4878 = vmatpush3.bf16.msra.mxu1 %v4877_v42 }
 0x4cc   : >> { %4879 = vmatprep.subr.bf16.mxu1 %v5840_v1 }
 0x4cd   : >> { %4929 = vmatpush3.bf16.msra.mxu0 %v4880_v4 }
 0x4ce   : >> { %4930 = vmatprep.subr.bf16.mxu0 %v5840_v1 }
 0x4cf   : >> { %4881 = vmatpush3.bf16.msra.mxu1 %v4880_v4  ;;  %v5088_v4 = vpack.c.bf16 %v7510_v3, %v7509_v12  ;;  %v7515_v3 = vld [vmem:[#allocation124_spill] sm:$0xff] }
 0x4d0   : >> { %4882 = vmatprep.subr.bf16.mxu1 %v5840_v1 }
 0x4d1   : >> { %4932 = vmatpush3.bf16.msra.mxu0 %v4883_v32 }
 0x4d2   : >> { %4933 = vmatprep.subr.bf16.mxu0 %v5840_v1 }
 0x4d3   : >> { %4884 = vmatpush3.bf16.msra.mxu1 %v4883_v32  ;;  %v5092_v32 = vpack.c.bf16 %v7512_v39, %v7511_v10 }
 0x4d4   : >> { %4885 = vmatprep.subr.bf16.mxu1 %v5840_v1  ;;  %v7495_v1 = vld [vmem:[#allocation105_spill] sm:$0xff] }
 0x4d5   : >> { %4935 = vmatpush3.bf16.msra.mxu0 %v4886_v7 }
 0x4d6   : >> { %5001 = vmatprep.subr.bf16.mxu0 %v6857_v8 }
 0x4d7   : >> { %4887 = vmatpush3.bf16.msra.mxu1 %v4886_v7  ;;  %v5096_v7 = vpack.c.bf16 %v7514_v54, %v7513_v11 }
 0x4d8   : >> { %4270 = vmatmul.mubr.f32.vlgmr.msra.gmra.mrb[34].mxu0 %v1826_v2  ;;  %4937 = vmatprep.subr.bf16.mxu1 %v6857_v8  ;;  %v7496_v2 = vld [vmem:[#allocation103_spill] sm:$0xff] }
 0x4d9   : >> { %5003 = vmatpush3.bf16.msra.mxu0 %v6857_v8  ;;  %4374 = vmatprep.mubr.f32.mxu0 %v7493_v59 }
 0x4da   : >> { %4200 = vmatmul.mubr.f32.vlgmr.msra.gmra.mrb[54].mxu1 %v1963_v37  ;;  %5005 = vmatprep.subr.bf16.mxu0 %v6863_v57  ;;  %v7508_v37 = vld [vmem:[#allocation117_spill] sm:$0xff] }
 0x4db   : >> { %4939 = vmatpush3.bf16.msra.mxu1 %v6857_v8  ;;  %4304 = vmatprep.mubr.f32.mxu1 %v7494_v55  ;;  %v7497_v8 = vld [vmem:[#allocation106_spill] sm:$0xff] }
 0x4dc   : >> { %4941 = vmatprep.subr.bf16.mxu1 %v6863_v57 }
 0x4dd   : >> { %5007 = vmatpush3.bf16.msra.mxu0 %v6863_v57 }
 0x4de   : >> { %5009 = vmatprep.subr.bf16.mxu0 %v6869_v5 }
 0x4df   : >> { %4943 = vmatpush3.bf16.msra.mxu1 %v6863_v57  ;;  %v7498_v57 = vld [vmem:[#allocation107_spill] sm:$0xff] }
 0x4e0   : >> { %4945 = vmatprep.subr.bf16.mxu1 %v6869_v5 }
 0x4e1   : >> { %5011 = vmatpush3.bf16.msra.mxu0 %v6869_v5 }
 0x4e2   : >> { %5013 = vmatprep.subr.bf16.mxu0 %v6875_v6 }
 0x4e3   : >> { %4947 = vmatpush3.bf16.msra.mxu1 %v6869_v5  ;;  %v5064_v5 = vpack.c.bf16 %v7498_v57, %v7497_v8 }
 0x4e4   : >> { %4949 = vmatprep.subr.bf16.mxu1 %v6875_v6 }
 0x4e5   : >> { %5015 = vmatpush3.bf16.msra.mxu0 %v6875_v6 }
 0x4e6   : >> { %5017 = vmatprep.subr.bf16.mxu0 %v6881_v0 }
 0x4e7   : >> { %4951 = vmatpush3.bf16.msra.mxu1 %v6875_v6  ;;  %v7499_v6 = vld [vmem:[#allocation108_spill] sm:$0xff] }
 0x4e8   : >> { %4953 = vmatprep.subr.bf16.mxu1 %v6881_v0 }
 0x4e9   : >> { %5019 = vmatpush3.bf16.msra.mxu0 %v6881_v0 }
 0x4ea   : >> { %5021 = vmatprep.subr.bf16.mxu0 %v6887_v40 }
 0x4eb   : >> { %4955 = vmatpush3.bf16.msra.mxu1 %v6881_v0  ;;  %v7500_v0 = vld [vmem:[#allocation109_spill] sm:$0xff] }
 0x4ec   : >> { %4957 = vmatprep.subr.bf16.mxu1 %v6887_v40 }
 0x4ed   : >> { %5023 = vmatpush3.bf16.msra.mxu0 %v6887_v40 }
 0x4ee   : >> { %5025 = vmatprep.subr.bf16.mxu0 %v6894_v60 }
 0x4ef   : >> { %4959 = vmatpush3.bf16.msra.mxu1 %v6887_v40  ;;  %v5068_v40 = vpack.c.bf16 %v7500_v0, %v7499_v6 }
 0x4f0   : >> { %4961 = vmatprep.subr.bf16.mxu1 %v6894_v60 }
 0x4f1   : >> { %5027 = vmatpush3.bf16.msra.mxu0 %v6894_v60 }
 0x4f2   : >> { %5029 = vmatprep.subr.bf16.mxu0 %v6902_v63 }
 0x4f3   : >> { %4963 = vmatpush3.bf16.msra.mxu1 %v6894_v60  ;;  %v7501_v60 = vld [vmem:[#allocation110_spill] sm:$0xff] }
 0x4f4   : >> { %4965 = vmatprep.subr.bf16.mxu1 %v6902_v63 }
 0x4f5   : >> { %5031 = vmatpush3.bf16.msra.mxu0 %v6902_v63 }
 0x4f6   : >> { %5033 = vmatprep.subr.bf16.mxu0 %v6904_v43 }
 0x4f7   : >> { %4967 = vmatpush3.bf16.msra.mxu1 %v6902_v63  ;;  %v7502_v63 = vld [vmem:[#allocation111_spill] sm:$0xff] }
 0x4f8   : >> { %4969 = vmatprep.subr.bf16.mxu1 %v6904_v43  ;;  %4375 = vmatmul.mubr.f32.vlgmr.msra.gmra.mrb[36].mxu0 %v7495_v1 }
 0x4f9   : >> { %5035 = vmatpush3.bf16.msra.mxu0 %v6904_v43  ;;  %4409 = vmatprep.mubr.f32.mxu0 %v7494_v55 }
 0x4fa   : >> { %5037 = vmatprep.subr.bf16.mxu0 %v6912_v9  ;;  %4305 = vmatmul.mubr.f32.vlgmr.msra.gmra.mrb[56].mxu1 %v7496_v2 }
 0x4fb   : >> { %4971 = vmatpush3.bf16.msra.mxu1 %v6904_v43  ;;  %4339 = vmatprep.mubr.f32.mxu1 %v7493_v59  ;;  %v5072_v43 = vpack.c.bf16 %v7502_v63, %v7501_v60 }
 0x4fc   : >> { %4973 = vmatprep.subr.bf16.mxu1 %v6912_v9 }
 0x4fd   : >> { %5039 = vmatpush3.bf16.msra.mxu0 %v6912_v9 }
 0x4fe   : >> { %5041 = vmatprep.subr.bf16.mxu0 %v6922_v58 }
 0x4ff   : >> { %4975 = vmatpush3.bf16.msra.mxu1 %v6912_v9  ;;  %v7503_v9 = vld [vmem:[#allocation112_spill] sm:$0xff] }
 0x500   : >> { %4977 = vmatprep.subr.bf16.mxu1 %v6922_v58 }
 0x501   : >> { %5043 = vmatpush3.bf16.msra.mxu0 %v6922_v58 }
 0x502   : >> { %5045 = vmatprep.subr.bf16.mxu0 %v6928_v61 }
 0x503   : >> { %4979 = vmatpush3.bf16.msra.mxu1 %v6922_v58  ;;  %v7504_v58 = vld [vmem:[#allocation113_spill] sm:$0xff] }
 0x504   : >> { %4981 = vmatprep.subr.bf16.mxu1 %v6928_v61 }
 0x505   : >> { %5047 = vmatpush3.bf16.msra.mxu0 %v6928_v61 }
 0x506   : >> { %5049 = vmatprep.subr.bf16.mxu0 %v6934_v33 }
 0x507   : >> { %4983 = vmatpush3.bf16.msra.mxu1 %v6928_v61  ;;  %v5076_v61 = vpack.c.bf16 %v7504_v58, %v7503_v9 }
 0x508   : >> { %4985 = vmatprep.subr.bf16.mxu1 %v6934_v33 }
 0x509   : >> { %5051 = vmatpush3.bf16.msra.mxu0 %v6934_v33 }
 0x50a   : >> { %5053 = vmatprep.subr.bf16.mxu0 %v6940_v38 }
 0x50b   : >> { %4987 = vmatpush3.bf16.msra.mxu1 %v6934_v33  ;;  %v7505_v33 = vld [vmem:[#allocation114_spill] sm:$0xff] }
 0x50c   : >> { %4989 = vmatprep.subr.bf16.mxu1 %v6940_v38 }
 0x50d   : >> { %5055 = vmatpush3.bf16.msra.mxu0 %v6940_v38 }
 0x50e   : >> { %5057 = vmatprep.subr.bf16.mxu0 %v6946_v34 }
 0x50f   : >> { %4991 = vmatpush3.bf16.msra.mxu1 %v6940_v38  ;;  %v7506_v38 = vld [vmem:[#allocation115_spill] sm:$0xff] }
 0x510   : >> { %4993 = vmatprep.subr.bf16.mxu1 %v6946_v34 }
 0x511   : >> { %5059 = vmatpush3.bf16.msra.mxu0 %v6946_v34 }
 0x512   : >> { %5061 = vmatprep.subr.bf16.mxu0 %v6952_v41 }
 0x513   : >> { %4995 = vmatpush3.bf16.msra.mxu1 %v6946_v34  ;;  %v5080_v34 = vpack.c.bf16 %v7506_v38, %v7505_v33 }
 0x514   : >> { %4997 = vmatprep.subr.bf16.mxu1 %v6952_v41 }
 0x515   : >> { %5063 = vmatpush3.bf16.msra.mxu0 %v6952_v41 }
 0x516   : >> { %5129 = vmatprep.subr.bf16.mxu0 %v5064_v5 }
 0x517   : >> { %4999 = vmatpush3.bf16.msra.mxu1 %v6952_v41  ;;  %v7507_v41 = vld [vmem:[#allocation116_spill] sm:$0xff] }
 0x518   : >> { %4410 = vmatmul.mubr.f32.vlgmr.msra.gmra.mrb[36].mxu0 %v7496_v2  ;;  %5065 = vmatprep.subr.bf16.mxu1 %v5064_v5  ;;  %v5084_v42 = vpack.c.bf16 %v7508_v37, %v7507_v41 }
 0x519   : >> { %5131 = vmatpush3.bf16.msra.mxu0 %v5064_v5 }
 0x51a   : >> { %4340 = vmatmul.mubr.f32.vlgmr.msra.gmra.mrb[58].mxu1 %v7495_v1  ;;  %5133 = vmatprep.subr.bf16.mxu0 %v5068_v40 }
 0x51b   : >> { %5067 = vmatpush3.bf16.msra.mxu1 %v5064_v5 }
 0x51c   : >> { %5069 = vmatprep.subr.bf16.mxu1 %v5068_v40 }
 0x51d   : >> { %5135 = vmatpush3.bf16.msra.mxu0 %v5068_v40 }
 0x51e   : >> { %5137 = vmatprep.subr.bf16.mxu0 %v5072_v43 }
 0x51f   : >> { %5071 = vmatpush3.bf16.msra.mxu1 %v5068_v40 }
 0x520   : >> { %5073 = vmatprep.subr.bf16.mxu1 %v5072_v43 }
 0x521   : >> { %5139 = vmatpush3.bf16.msra.mxu0 %v5072_v43 }
 0x522   : >> { %5141 = vmatprep.subr.bf16.mxu0 %v5076_v61 }
 0x523   : >> { %5075 = vmatpush3.bf16.msra.mxu1 %v5072_v43 }
 0x524   : >> { %5077 = vmatprep.subr.bf16.mxu1 %v5076_v61 }
 0x525   : >> { %5143 = vmatpush3.bf16.msra.mxu0 %v5076_v61 }
 0x526   : >> { %5145 = vmatprep.subr.bf16.mxu0 %v5080_v34 }
 0x527   : >> { %5079 = vmatpush3.bf16.msra.mxu1 %v5076_v61 }
 0x528   : >> { %5081 = vmatprep.subr.bf16.mxu1 %v5080_v34 }
 0x529   : >> { %5147 = vmatpush3.bf16.msra.mxu0 %v5080_v34 }
 0x52a   : >> { %5149 = vmatprep.subr.bf16.mxu0 %v5084_v42 }
 0x52b   : >> { %5083 = vmatpush3.bf16.msra.mxu1 %v5080_v34 }
 0x52c   : >> { %5085 = vmatprep.subr.bf16.mxu1 %v5084_v42 }
 0x52d   : >> { %5151 = vmatpush3.bf16.msra.mxu0 %v5084_v42 }
 0x52e   : >> { %5153 = vmatprep.subr.bf16.mxu0 %v5088_v4 }
 0x52f   : >> { %5087 = vmatpush3.bf16.msra.mxu1 %v5084_v42 }
 0x530   : >> { %5089 = vmatprep.subr.bf16.mxu1 %v5088_v4 }
 0x531   : >> { %5155 = vmatpush3.bf16.msra.mxu0 %v5088_v4 }
 0x532   : >> { %5157 = vmatprep.subr.bf16.mxu0 %v5092_v32 }
 0x533   : >> { %5091 = vmatpush3.bf16.msra.mxu1 %v5088_v4  ;;  %v7516_v4 = vld [vmem:[#allocation125_spill] sm:$0xff] }
 0x534   : >> { %5093 = vmatprep.subr.bf16.mxu1 %v5092_v32  ;;  %v5100_v10 = vpack.c.bf16 %v7516_v4, %v7515_v3 }
 0x535   : >> { %5159 = vmatpush3.bf16.msra.mxu0 %v5092_v32 }
 0x536   : >> { %5161 = vmatprep.subr.bf16.mxu0 %v5096_v7 }
 0x537   : >> { %5095 = vmatpush3.bf16.msra.mxu1 %v5092_v32 }
 0x538   : >> { %5097 = vmatprep.subr.bf16.mxu1 %v5096_v7 }
 0x58d   : >> { %v2033_v8 = vpop.f32.mrb[52].mxu1 }
 0x58e   : >> { %v4166_v57 = vpop.f32.mrb[53].mxu1 }
 0x5ab   : >> { %v2244_v5 = vpop.f32.mrb[34].mxu0 }
 0x5ac   : >> { %v4271_v6 = vpop.f32.mrb[35].mxu0  ;;  %v2249_v63 = vmul.f32 %v2244_v5, %v2244_v5  ;;  %v5108_v5 = vpack.c.bf16 %v6570_v56, %v6568_v62 }
 0x5ad   : >> { %v2103_v0 = vpop.f32.mrb[54].mxu1  ;;  %v7518_v6 = vld [vmem:[#allocation127_spill] sm:$0xff] }
 0x5ae   : >> { %v2107_v40 = vsub.f32 %v2033_v8, %v2103_v0  ;;  %v4201_v60 = vpop.f32.mrb[55].mxu1  ;;  %v7517_v8 = vld [vmem:[#allocation126_spill] sm:$0xff]  ;;  %v7519_v0 = vld [vmem:[#allocation128_spill] sm:$0xff] }
 0x5af   : >> { %v5104_v57 = vpack.c.bf16 %v6566_v53, %v7517_v8  ;;  %v7520_v60 = vld [vmem:[#allocation129_spill] sm:$0xff] }
 0x5b0   : >> { %v2248_v43 = vmul.f32 %v2107_v40, %v2107_v40  ;;  %v5112_v40 = vpack.c.bf16 %v7519_v0, %v7518_v6 }
 0x5b2   : >> { %v2250_v9 = vadd.f32 %v2249_v63, %v2248_v43  ;;  %v7522_v43 = vld [vmem:[#allocation131_spill] sm:$0xff] }
 0x5b4   : >> { %5383 = vrsqrt.f32 %v2250_v9  ;;  %vm2253_vm1 = vcmp.eq.f32.partialorder %v2250_v9, inf  ;;  %v2256_v33 = vand.u32 2147483648, %v2250_v9  ;;  %vm2255_vm2 = vcmp.eq.f32.partialorder %v2250_v9, 0.0 }
 0x5be   : >> { %v5384_v58 = vpop.eup %5383 }
 0x5bf   : >> { %v2252_v61 = vmul.f32 %v5384_v58, %v2250_v9 }
 0x5c1   : >> { %v2254_v38 = vsel %vm2253_vm1, %v2250_v9, %v2252_v61  ;;  %v7523_v9 = vld [vmem:[#allocation132_spill] sm:$0xff]  ;;  %v7524_v61 = vld [vmem:[#allocation133_spill] sm:$0xff] }
 0x5c2   : >> { %v2257_v34 = vsel %vm2255_vm2, %v2256_v33, %v2254_v38  ;;  %v5120_v58 = vpack.c.bf16 %v7523_v9, %v7522_v43  ;;  %v7525_v33 = vld [vmem:[#allocation134_spill] sm:$0xff] }
 0x5c3   : >> { %2260 = vst [vmem:[%s2259_s24] sm:$0xff] %v2257_v34  ;;  %v5124_v38 = vpack.c.bf16 %v7525_v33, %v7524_v61  ;;  %s7526_s24 = sld [smem:[#allocation146_spill]] (%p778_p13) }
 0x5c9   : > { %s7149_s25 = scalar_lea.hbm (%p778_p13), %s7526_s24, %s3181_s2 }
 0x5cd   : >> { %v4306_v41 = vpop.f32.mrb[56].mxu1 }
 0x5ce   : >> { %v2327_v37 = vpop.f32.mrb[57].mxu1 }
 0x5eb   : >> { %v4411_v42 = vpop.f32.mrb[36].mxu0 }
 0x5ec   : >> { %v2554_v12 = vpop.f32.mrb[37].mxu0 }
 0x5ed   : >> { %v4341_v39 = vpop.f32.mrb[58].mxu1  ;;  %4514 = vmatprep.mubr.f32.mxu0 %v2554_v12 }
 0x5ee   : >> { %v2412_v32 = vsub.f32 %v4306_v41, %v4341_v39  ;;  %v2402_v11 = vpop.f32.mrb[59].mxu1  ;;  %4515 = vmatmul.mubr.f32.vlgmr.msra.gmra.mrb[38].mxu0 %v4411_v42 }
 0x5ef   : >> { %v2411_v54 = vsub.f32 %v2327_v37, %v2402_v11  ;;  %5163 = vmatpush3.bf16.msra.mxu0 %v5096_v7 }
 0x5f0   : >> { %5165 = vmatprep.subr.bf16.mxu0 %v5100_v10 }
 0x5f1   : >> { %4444 = vmatprep.mubr.f32.mxu1 %v2411_v54  ;;  %4549 = vmatprep.mubr.f32.mxu0 %v2411_v54 }
 0x5f2   : >> { %4445 = vmatmul.mubr.f32.vlgmr.msra.gmra.mrb[60].mxu1 %v2412_v32 }
 0x5f3   : >> { %5099 = vmatpush3.bf16.msra.mxu1 %v5096_v7  ;;  %5167 = vmatpush3.bf16.msra.mxu0 %v5100_v10  ;;  %v7521_v7 = vld [vmem:[#allocation130_spill] sm:$0xff] }
 0x5f4   : >> { %4479 = vmatprep.mubr.f32.mxu1 %v2554_v12  ;;  %5101 = vmatprep.subr.bf16.mxu1 %v5100_v10  ;;  %v5116_v63 = vpack.c.bf16 %v7521_v7, %v7520_v60 }
 0x5f5   : >> { %5169 = vmatprep.subr.bf16.mxu0 %v5104_v57 }
 0x5f7   : >> { %5103 = vmatpush3.bf16.msra.mxu1 %v5100_v10  ;;  %5171 = vmatpush3.bf16.msra.mxu0 %v5104_v57 }
 0x5f8   : >> { %5105 = vmatprep.subr.bf16.mxu1 %v5104_v57  ;;  %5173 = vmatprep.subr.bf16.mxu0 %v5108_v5 }
 0x5fb   : >> { %5107 = vmatpush3.bf16.msra.mxu1 %v5104_v57  ;;  %5175 = vmatpush3.bf16.msra.mxu0 %v5108_v5 }
 0x5fc   : >> { %5109 = vmatprep.subr.bf16.mxu1 %v5108_v5  ;;  %5177 = vmatprep.subr.bf16.mxu0 %v5112_v40 }
 0x5ff   : >> { %5111 = vmatpush3.bf16.msra.mxu1 %v5108_v5  ;;  %5179 = vmatpush3.bf16.msra.mxu0 %v5112_v40 }
 0x600   : >> { %5113 = vmatprep.subr.bf16.mxu1 %v5112_v40  ;;  %5181 = vmatprep.subr.bf16.mxu0 %v5116_v63 }
 0x603   : >> { %5115 = vmatpush3.bf16.msra.mxu1 %v5112_v40  ;;  %5183 = vmatpush3.bf16.msra.mxu0 %v5116_v63 }
 0x604   : >> { %5117 = vmatprep.subr.bf16.mxu1 %v5116_v63  ;;  %5185 = vmatprep.subr.bf16.mxu0 %v5120_v58 }
 0x607   : >> { %5119 = vmatpush3.bf16.msra.mxu1 %v5116_v63  ;;  %5187 = vmatpush3.bf16.msra.mxu0 %v5120_v58 }
 0x608   : >> { %5121 = vmatprep.subr.bf16.mxu1 %v5120_v58  ;;  %5189 = vmatprep.subr.bf16.mxu0 %v5124_v38 }
 0x60b   : >> { %5123 = vmatpush3.bf16.msra.mxu1 %v5120_v58  ;;  %5191 = vmatpush3.bf16.msra.mxu0 %v5124_v38 }
 0x60c   : >> { %5125 = vmatprep.subr.bf16.mxu1 %v5124_v38 }
 0x60e   : >> { %4550 = vmatmul.mubr.f32.vlgmr.msra.gmra.mrb[38].mxu0 %v2412_v32 }
 0x60f   : >> { %5127 = vmatpush3.bf16.msra.mxu1 %v5124_v38 }
 0x612   : >> { %4480 = vmatmul.mubr.f32.vlgmr.msra.gmra.mrb[62].mxu1 %v4411_v42 }
 0x6c5   : >> { %v4446_v34 = vpop.f32.mrb[60].mxu1 }
 0x6c6   : >> { %v2629_v41 = vpop.f32.mrb[61].mxu1 }
 0x6e1   : >> { %v4551_v37 = vpop.f32.mrb[38].mxu0 }
 0x6e2   : >> { %v2856_v12 = vpop.f32.mrb[39].mxu0  ;;  %v2868_v11 = vmul.f32 %v4551_v37, %v4551_v37 }
 0x6e3   : >> { %v2867_v8 = vmul.f32 %v2856_v12, %v2856_v12 }
 0x6e5   : >> { %v4481_v3 = vpop.f32.mrb[62].mxu1 }
 0x6e6   : >> { %v2714_v4 = vsub.f32 %v4446_v34, %v4481_v3  ;;  %v2704_v10 = vpop.f32.mrb[63].mxu1 }
 0x6e7   : >> { %v2713_v39 = vsub.f32 %v2629_v41, %v2704_v10 }
 0x6e8   : >> { %v2866_v54 = vmul.f32 %v2714_v4, %v2714_v4 }
 0x6e9   : >> { %v2865_v57 = vmul.f32 %v2713_v39, %v2713_v39 }
 0x6ea   : >> { %v2870_v5 = vadd.f32 %v2868_v11, %v2866_v54 }
 0x6eb   : >> { %v2869_v6 = vadd.f32 %v2867_v8, %v2865_v57 }
 0x6ec   : >> { %5385 = vrsqrt.f32 %v2870_v5  ;;  %vm2880_vm3 = vcmp.eq.f32.partialorder %v2870_v5, inf  ;;  %v2883_v40 = vand.u32 2147483648, %v2870_v5  ;;  %vm2882_vm4 = vcmp.eq.f32.partialorder %v2870_v5, 0.0 }
 0x6ed   : >> { %5387 = vrsqrt.f32 %v2869_v6  ;;  %vm2873_vm5 = vcmp.eq.f32.partialorder %v2869_v6, inf  ;;  %v2876_v63 = vand.u32 2147483648, %v2869_v6  ;;  %vm2875_vm6 = vcmp.eq.f32.partialorder %v2869_v6, 0.0 }
 0x6f6   : >> { %v5386_v42 = vpop.eup %5385  ;;  %780 = sbr.rel (!%p778_p13) target bundleno = 433 (0x1b1), region = 184 }
 0x6f7   : >> { %v5388_v32 = vpop.eup %5387  ;;  %v2879_v0 = vmul.f32 %v5386_v42, %v2870_v5 }
 0x6f8   : >> { %v2872_v60 = vmul.f32 %v5388_v32, %v2869_v6 }
 0x6f9   : >> { %v2881_v7 = vsel %vm2880_vm3, %v2870_v5, %v2879_v0 }
 0x6fa   : >> { %v2884_v43 = vsel %vm2882_vm4, %v2883_v40, %v2881_v7  ;;  %v2874_v9 = vsel %vm2873_vm5, %v2869_v6, %v2872_v60 }
 0x6fb   : >> { %2888 = vst [vmem:[%s2886_s0 + $0x8] sm:$0xff] %v2884_v43  ;;  %v2877_v58 = vsel %vm2875_vm6, %v2876_v63, %v2874_v9 }
 0x6fc   : >> { %2887 = vst [vmem:[%s2886_s0] sm:$0xff] %v2877_v58  ;;  %s2890_s0 = scalar_lea.sflag (%p778_p13), [#allocation4], %s6276_s23 }
 0x6fd   : > { %5712 = shalt.err (!%p5709_p5)
}
 0x6fe   : > { %s5713_s13 = scalar_lea.hbm %s7149_s25, 512  ;;  %s5717_s28 = scalar_lea.hbm %s7526_s24, 1024 }
 0x6ff   : > { %p5714_p7 = scmp.ne.s32.totalorder %s7149_s25, %s5713_s13  ;;  %p5718_p12 = scmp.lt.u32.totalorder %s7149_s25, %s7526_s24 }
 0x700   : > { %p5719_p1 = scmp.lt.u32.totalorder %s5717_s28, %s5713_s13  ;;  %p5721_p0 = scmp.lt.u32.totalorder %s5713_s13, %s7149_s25 }
 0x701   : > { %p5715_p6 = pnand %p5714_p7, %p7527_p2 }
 0x702   : > { %p5720_p13 = por %p5719_p1, %p5718_p12 }
 0x703   : > { %p5716_p9 = pneg %p5715_p6 }
 0x704   : > { %p5722_p8 = por %p5721_p0, %p5720_p13 }
 0x706   : > { %p5723_p4 = pnand %p5722_p8, %p5716_p9 }
 0x708   : > { %5726 = shalt.err (!%p5723_p4)
}
 0x709   : > { %s5844_s4 = smov 128   ;;  %s5845_s5 = smov 8  }
 0x70a   : > { %5258 = dma.vmem_to_hbm [thread:$0]  (%p7527_p2), %s7152_s3, 512, %s7149_s25, %s2890_s0, %s5844_s4, %s5844_s4, %s5845_s5  }
 0x70b   : > { %s3183_s13 = sshll.u32 %s5943_s19, 10  ;;  %s2925_s2 = sshll.u32 %s6594_s1, 4  ;;  %s7188_s2 = int_to_ptr.vmem [resolvable:$true] %s2925_s2 }
 0x70c   : > { %s7528_s10 = sld [smem:[#allocation147_spill]]  ;;  %s2895_s6 = scalar_lea.sflag [#allocation22], %s6276_s23 }
 0x70d   : > { %s5727_s7 = scalar_lea.vmem %s7188_s2, 1024  ;;  %s5846_s8 = smov [#allocation21]  }
 0x70e   : > { %p5728_p10 = scmp.ne.s32.totalorder %s7188_s2, %s5727_s7  ;;  %s5731_s3 = sshll.u32 %s5846_s8, 4  ;;  %s5732_s3 = int_to_ptr.vmem [resolvable:$false] %s5731_s3 }
 0x70f   : > { %s5733_s19 = scalar_lea.vmem %s5732_s3, 2048  ;;  %p5734_p5 = scmp.lt.s32.totalorder %s7188_s2, %s5732_s3 }
 0x710   : > { %p5729_p11 = pnand %p5728_p10, %p7527_p2  ;;  %p5735_p7 = scmp.lt.s32.totalorder %s5733_s19, %s5727_s7 }
 0x712   : > { %s7186_s27 = scalar_lea.hbm %s7528_s10, %s3183_s13  ;;  %p5730_p3 = pneg %p5729_p11 }
 0x713   : > { %p5736_p6 = por %p5735_p7, %p5734_p5 }
 0x715   : > { %p5737_p9 = pnand %p5736_p6, %p5730_p3 }
 0x717   : > { %5740 = shalt.err (!%p5737_p9)
}
 0x718   : > { %s5741_s1 = scalar_lea.hbm %s7186_s27, 1024  ;;  %s5745_s8 = scalar_lea.hbm %s7528_s10, 2048 }
 0x719   : > { %p5742_p12 = scmp.ne.s32.totalorder %s7186_s27, %s5741_s1  ;;  %p5746_p0 = scmp.lt.u32.totalorder %s7186_s27, %s7528_s10 }
 0x71a   : > { %p5747_p8 = scmp.lt.u32.totalorder %s5745_s8, %s5741_s1  ;;  %p5749_p10 = scmp.lt.u32.totalorder %s5741_s1, %s7186_s27 }
 0x71b   : > { %p5743_p1 = pnand %p5742_p12, %p7527_p2 }
 0x71c   : > { %p5748_p4 = por %p5747_p8, %p5746_p0 }
 0x71d   : > { %p5744_p13 = pneg %p5743_p1 }
 0x71e   : > { %p5750_p11 = por %p5749_p10, %p5748_p4 }
 0x720   : > { %p5751_p3 = pnand %p5750_p11, %p5744_p13 }
 0x722   : > { %5754 = shalt.err (!%p5751_p3)
}
 0x723   : > { %5259 = dma.vmem_to_hbm [thread:$0]  (%p7527_p2), %s7188_s2, 1024, %s7186_s27, %s2895_s6, %s5844_s4, %s5844_s4, %s5845_s5  }
 0x724 PF: > { %s2940_s7 = sand.u32 1, %s5809_s29   ;;  %p7529_p5 = scmp.ne.s32.totalorder %s7300_s18, 0 }
 0x725   : > { %p7530_p7 = scmp.ge.s32.totalorder %s5821_s16, 2  ;;  %s2941_s28 = scalar_lea.sflag [#allocation4], %s2940_s7 }
 0x727   : > { %p5298_p6 = pnand %p7530_p7, %p7529_p5 }
 0x729   : > { %5800 = dma.done.wait (!%p5298_p6), %s2941_s28, 512  }
 0x72a   : > { %5802 = vsyncadd (!%p5298_p6), %s2941_s28, 4294966784  ;;  %s2950_s22 = scalar_lea.sflag [#allocation22], %s2940_s7 }
 0x72b   : > { %5804 = dma.done.wait (!%p5298_p6), %s2950_s22, 1024  }
 0x72c   : > { %5806 = vsyncadd (!%p5298_p6), %s2950_s22, 4294966272  ;;  %p36_p2 = scmp.ge.s32.totalorder %s6194_s21, 4   ;;  %s7531_s29 = smov %s5813_s30 }
 0x72d   : > { %s7532_s30 = smov %s5817_s15  ;;  %s7533_s15 = smov %s6205_s9 }
 0x72e   : > { %s7534_s16 = smov %s6194_s21  ;;  %38 = sbr.rel (!%p36_p2) target bundleno = 26 (0x1a), region = 195 }
 0x735   :  { %2955 = vsyncpa [#allocation3], 1 }
 0x736   :  { %2957 = vsyncpa [#allocation3 + $0x1], 1 }
 0x737   :  { %2958 = vsyncpa [#allocation6], 1 }
 0x738   :  { %2959 = vsyncpa [#allocation9], 1 }
 0x739   :  { %2960 = vsyncpa [#allocation12], 1 }
 0x73a   :  { %2961 = vsyncpa [#allocation15], 1 }
 0x73b   :  { %2962 = vsyncpa [#allocation18], 1 }
 0x73c   :  { %2963 = vsyncpa [#allocation4], 1 }
 0x73d   :  { %2965 = vsyncpa [#allocation4 + $0x1], 1 }
 0x73e   :  { %2966 = vsyncpa [#allocation22], 1 }
 0x73f   :  { %2968 = vsyncpa [#allocation22 + $0x1], 1 }

</bundles_post_ra>
